<compile_context>
chip_gen: v6e
topology: v6e:2x2x1
jax: 0.10.0
libtpu: 0.0.40
codegen_flags: <defaults>
</compile_context>

<pallas_src>
import functools
import math

import jax
import jax.numpy as jnp
from jax.experimental import pallas as pl
from jax.experimental.pallas import tpu as pltpu

# Small test-scale hyper-parameters consistent with SlideEncoder's constructor
# (dim_feedforward = d_model // 2, nhead divides d_model).
D_MODEL = 32
NHEAD = 4
HEAD_DIM = D_MODEL // NHEAD
DIM_FF = D_MODEL // 2
NUM_LAYERS = 2
NUM_LABEL = 16
PADDING_IDX = 0
DIM_SLIDE = 32
LN_EPS = 1e-5          # PyTorch LayerNorm default
LEAKY_SLOPE = 0.01     # nn.LeakyReLU default
NEG_INF = -1e30


def _layer_norm(x, gamma, beta):
    mean = jnp.mean(x, axis=-1, keepdims=True)
    var = jnp.mean(jnp.square(x - mean), axis=-1, keepdims=True)
    return (x - mean) * jax.lax.rsqrt(var + LN_EPS) * gamma + beta


# ---------------------------------------------------------------------------
# Fused Pallas kernel: whole SlideEncoder forward for one batch chunk
# ---------------------------------------------------------------------------
def slide_encoder_kernel(bbox_ref, lab_ref, maskb_ref,
                         wb_ref, emb_ref, win_ref, wout_ref, sv_ref,
                         wqkv_ref, wo_ref, w1_ref, w2_ref, lvec_ref,
                         o_ref, *, nhead):
    Bt, L, _ = bbox_ref.shape
    NLab, E = emb_ref.shape
    DS = wout_ref.shape[1]
    F = w1_ref.shape[2]
    num_layers = wqkv_ref.shape[0]
    D = E // nhead
    BL = Bt * L
    f32 = jnp.float32

    # ---- input projection: fc_bbox + emb_label (one-hot matmul) + enc_fc_in + LeakyReLU ----
    bbox = bbox_ref[...].reshape(BL, 4).astype(f32)                   # (BL, 4)
    lab = lab_ref[...].reshape(BL, 1)                                 # (BL, 1) int32
    onehot = (lab == jax.lax.broadcasted_iota(jnp.int32, (BL, NLab), 1)).astype(f32)

    b_emb = jnp.dot(bbox, wb_ref[...], preferred_element_type=f32) + sv_ref[1:2, :E]
    l_emb = jnp.dot(onehot, emb_ref[...], preferred_element_type=f32)
    win = win_ref[...]
    # enc_fc_in(cat([b, l], -1)) == b @ Win[:E] + l @ Win[E:] + b_in  (no lane concat needed)
    x = (jnp.dot(b_emb, win[0:E, :], preferred_element_type=f32)
         + jnp.dot(l_emb, win[E:2 * E, :], preferred_element_type=f32)
         + sv_ref[2:3, :E])
    x = jnp.where(x > 0, x, LEAKY_SLOPE * x)                          # LeakyReLU

    # ---- prepend learned token: row 0 of every sequence is overwritten with the token ----
    ridx = jax.lax.broadcasted_iota(jnp.int32, (BL, 1), 0)
    if Bt == 1:
        is_tok = ridx == 0
    else:
        is_tok = (ridx % L) == 0
    token = sv_ref[0:1, :E]                                           # (1, E)
    x = jnp.where(is_tok, token, x)                                   # (BL, E)

    # ---- additive attention bias: key padding (+ cross-batch block mask if Bt > 1) ----
    key_bias = maskb_ref[...].reshape(1, BL)                          # (1, BL)
    if Bt > 1:
        rb = ridx // L
        key_bias = key_bias + jnp.where(rb == jnp.transpose(rb), 0.0, NEG_INF)

    # ---- transformer encoder layers (post-norm, ReLU FFN, eval-mode dropout = identity) ----
    for li in range(num_layers):
        lv = lvec_ref[li]                                             # (8, 3E) packed vectors
        wo_l = wo_ref[li]                                             # (E, E)
        # scale 1/sqrt(D) is pre-folded into the Q columns of wqkv / bqkv
        qkv = jnp.dot(x, wqkv_ref[li], preferred_element_type=f32) + lv[0:1, :]

        attn = jnp.zeros((BL, E), f32)
        for h in range(nhead):                                        # static unroll over heads
            qh = qkv[:, h * D:(h + 1) * D]
            kh = qkv[:, E + h * D:E + (h + 1) * D]
            vh = qkv[:, 2 * E + h * D:2 * E + (h + 1) * D]
            s = jnp.dot(qh, kh.T, preferred_element_type=f32) + key_bias
            s = s - jnp.max(s, axis=-1, keepdims=True)
            p = jnp.exp(s)
            p = p / jnp.sum(p, axis=-1, keepdims=True)
            ctx = jnp.dot(p, vh, preferred_element_type=f32)          # (BL, D)
            # fold the output projection per head (avoids the lane concat of heads)
            attn = attn + jnp.dot(ctx, wo_l[h * D:(h + 1) * D, :],
                                  preferred_element_type=f32)
        attn = attn + lv[1:2, :E]                                     # out_proj bias
        x = _layer_norm(x + attn, lv[2:3, :E], lv[3:4, :E])           # post-norm 1

        h1 = jnp.maximum(
            jnp.dot(x, w1_ref[li], preferred_element_type=f32) + lv[4:5, :F], 0.0)
        ff = jnp.dot(h1, w2_ref[li], preferred_element_type=f32) + lv[5:6, :E]
        x = _layer_norm(x + ff, lv[6:7, :E], lv[7:8, :E])             # post-norm 2

    # ---- take token position (row 0 per sequence) and project: fc_out ----
    tok_out = x.reshape(Bt, L, E)[:, 0, :]                            # (Bt, E)
    slide = jnp.dot(tok_out, wout_ref[...], preferred_element_type=f32) + sv_ref[3:4, :DS]
    o_ref[...] = slide.reshape(Bt, 1, DS).astype(o_ref.dtype)


# ---------------------------------------------------------------------------
# Wrapper: glue (sequence padding for the token slot, mask bias) + pallas_call
# ---------------------------------------------------------------------------
def slide_encoder_forward(bbox, label, padding_mask, kp):
    B, N, _ = bbox.shape
    L = N + 1
    DS = kp["wout"].shape[1]

    num_tiles = 2 if (B >= 2 and B % 2 == 0) else 1   # 2-way parallel axis (v7x megacore)
    Bt = B // num_tiles

    # Reserve position 0 for the learned token (filled inside the kernel).
    bbox_p = jnp.concatenate(
        [jnp.zeros((B, 1, 4), jnp.float32), bbox.astype(jnp.float32)], axis=1)   # (B, L, 4)
    lab_p = jnp.concatenate(
        [jnp.full((B, 1, 1), PADDING_IDX, jnp.int32),
         label.astype(jnp.int32)[..., None]], axis=1)                            # (B, L, 1)
    pad = jnp.concatenate([jnp.zeros((B, 1), bool), padding_mask], axis=1)        # (B, L)
    maskb = jnp.where(pad, NEG_INF, 0.0).astype(jnp.float32)[:, None, :]          # (B, 1, L)

    def full_spec(shape):
        nd = len(shape)
        return pl.BlockSpec(shape, lambda b, _nd=nd: (0,) * _nd)

    in_specs = [
        pl.BlockSpec((Bt, L, 4), lambda b: (b, 0, 0)),    # bbox (token slot padded)
        pl.BlockSpec((Bt, L, 1), lambda b: (b, 0, 0)),    # labels (token slot padded)
        pl.BlockSpec((Bt, 1, L), lambda b: (b, 0, 0)),    # key-padding bias
        full_spec(kp["wb"].shape),                        # fc_bbox weight   (4, E)
        full_spec(kp["emb"].shape),                       # embedding table  (NLab, E)
        full_spec(kp["win"].shape),                       # enc_fc_in weight (2E, E)
        full_spec(kp["wout"].shape),                      # fc_out weight    (E, DS)
        full_spec(kp["sv"].shape),                        # packed module vectors (4, E)
        full_spec(kp["wqkv"].shape),                      # (NL, E, 3E) (Q pre-scaled)
        full_spec(kp["wo"].shape),                        # (NL, E, E)
        full_spec(kp["w1"].shape),                        # (NL, E, F)
        full_spec(kp["w2"].shape),                        # (NL, F, E)
        full_spec(kp["lvec"].shape),                      # packed per-layer vectors (NL, 8, 3E)
    ]
    out_spec = pl.BlockSpec((Bt, 1, DS), lambda b: (b, 0, 0))

    out3 = pl.pallas_call(
        functools.partial(slide_encoder_kernel, nhead=NHEAD),
        out_shape=jax.ShapeDtypeStruct((B, 1, DS), jnp.float32),
        grid=(num_tiles,),
        in_specs=in_specs,
        out_specs=out_spec,
        compiler_params=pltpu.CompilerParams(dimension_semantics=("parallel",)),
    )(bbox_p, lab_p, maskb,
      kp["wb"], kp["emb"], kp["win"], kp["wout"], kp["sv"],
      kp["wqkv"], kp["wo"], kp["w1"], kp["w2"], kp["lvec"])
    return out3.reshape(B, DS)


# ---------------------------------------------------------------------------
# Parameter init (canonical, math-orientation (in, out)) and kernel-side packing
# ---------------------------------------------------------------------------
def init_params(key):
    s = 0.05
    ks = jax.random.split(key, 8 + NUM_LAYERS)
    emb = jax.random.normal(ks[0], (NUM_LABEL, D_MODEL), jnp.float32) * s
    emb = emb.at[PADDING_IDX].set(0.0)                    # padding_idx row is zero
    params = dict(
        emb=emb,
        wb=jax.random.normal(ks[1], (4, D_MODEL), jnp.float32) * s,
        bb=jax.random.normal(ks[2], (D_MODEL,), jnp.float32) * s,
        win=jax.random.normal(ks[3], (2 * D_MODEL, D_MODEL), jnp.float32) * s,
        bin=jax.random.normal(ks[4], (D_MODEL,), jnp.float32) * s,
        token=jax.random.normal(ks[5], (1, 1, D_MODEL), jnp.float32),
        wout=jax.random.normal(ks[6], (D_MODEL, DIM_SLIDE), jnp.float32) * s,
        bout=jax.random.normal(ks[7], (DIM_SLIDE,), jnp.float32) * s,
        layers=[],
    )
    for i in range(NUM_LAYERS):
        k = jax.random.split(ks[8 + i], 8)
        params["layers"].append(dict(
            wqkv=jax.random.normal(k[0], (D_MODEL, 3 * D_MODEL), jnp.float32) * s,
            bqkv=jax.random.normal(k[1], (3 * D_MODEL,), jnp.float32) * s,
            wo=jax.random.normal(k[2], (D_MODEL, D_MODEL), jnp.float32) * s,
            bo=jax.random.normal(k[3], (D_MODEL,), jnp.float32) * s,
            g1=jnp.ones((D_MODEL,), jnp.float32),
            b1=jnp.zeros((D_MODEL,), jnp.float32),
            w1=jax.random.normal(k[4], (D_MODEL, DIM_FF), jnp.float32) * s,
            bf1=jax.random.normal(k[5], (DIM_FF,), jnp.float32) * s,
            w2=jax.random.normal(k[6], (DIM_FF, D_MODEL), jnp.float32) * s,
            bf2=jax.random.normal(k[7], (D_MODEL,), jnp.float32) * s,
            g2=jnp.ones((D_MODEL,), jnp.float32),
            b2=jnp.zeros((D_MODEL,), jnp.float32),
        ))
    return params


def prepare_params(p):
    """Pack canonical params into the (few) operands the fused kernel consumes."""
    E = D_MODEL
    scale = 1.0 / math.sqrt(HEAD_DIM)
    qmul = jnp.concatenate([jnp.full((E,), scale, jnp.float32),
                            jnp.ones((2 * E,), jnp.float32)])
    wqkv = jnp.stack([l["wqkv"] for l in p["layers"]]) * qmul[None, None, :]
    bqkv = jnp.stack([l["bqkv"] for l in p["layers"]]) * qmul[None, :]
    wo = jnp.stack([l["wo"] for l in p["layers"]])
    w1 = jnp.stack([l["w1"] for l in p["layers"]])
    w2 = jnp.stack([l["w2"] for l in p["layers"]])
    F = w1.shape[-1]

    lvec = jnp.zeros((NUM_LAYERS, 8, 3 * E), jnp.float32)
    lvec = lvec.at[:, 0, :].set(bqkv)
    lvec = lvec.at[:, 1, :E].set(jnp.stack([l["bo"] for l in p["layers"]]))
    lvec = lvec.at[:, 2, :E].set(jnp.stack([l["g1"] for l in p["layers"]]))
    lvec = lvec.at[:, 3, :E].set(jnp.stack([l["b1"] for l in p["layers"]]))
    lvec = lvec.at[:, 4, :F].set(jnp.stack([l["bf1"] for l in p["layers"]]))
    lvec = lvec.at[:, 5, :E].set(jnp.stack([l["bf2"] for l in p["layers"]]))
    lvec = lvec.at[:, 6, :E].set(jnp.stack([l["g2"] for l in p["layers"]]))
    lvec = lvec.at[:, 7, :E].set(jnp.stack([l["b2"] for l in p["layers"]]))

    DS = p["wout"].shape[1]
    sv = jnp.zeros((4, max(E, DS)), jnp.float32)
    sv = sv.at[0, :E].set(p["token"].reshape(E))
    sv = sv.at[1, :E].set(p["bb"])
    sv = sv.at[2, :E].set(p["bin"])
    sv = sv.at[3, :DS].set(p["bout"])

    return dict(wb=p["wb"], emb=p["emb"], win=p["win"], wout=p["wout"],
                sv=sv, wqkv=wqkv, wo=wo, w1=w1, w2=w2, lvec=lvec)


# ---------------------------------------------------------------------------
# Pure-JAX reference mirroring PyTorch eval semantics (uses canonical params)
# ---------------------------------------------------------------------------
def reference_forward(bbox, label, padding_mask, p):
    B, N, _ = bbox.shape
    E, H, D = D_MODEL, NHEAD, HEAD_DIM
    L = N + 1

    b = bbox.astype(jnp.float32) @ p["wb"] + p["bb"]
    l = p["emb"][label]
    x = jnp.concatenate([b, l], axis=-1) @ p["win"] + p["bin"]
    x = jnp.where(x > 0, x, LEAKY_SLOPE * x)                           # LeakyReLU
    tok = jnp.broadcast_to(p["token"].reshape(1, 1, E), (B, 1, E))
    x = jnp.concatenate([tok, x], axis=1)                              # (B, L, E)

    pad = jnp.concatenate([jnp.zeros((B, 1), bool), padding_mask], axis=1)
    bias = jnp.where(pad, NEG_INF, 0.0)[:, None, None, :]              # (B, 1, 1, L)
    scale = 1.0 / math.sqrt(D)

    for lp in p["layers"]:
        qkv = x @ lp["wqkv"] + lp["bqkv"]
        q, k, v = jnp.split(qkv, 3, axis=-1)
        qh = q.reshape(B, L, H, D)
        kh = k.reshape(B, L, H, D)
        vh = v.reshape(B, L, H, D)
        s = jnp.einsum('bqhd,bkhd->bhqk', qh * scale, kh) + bias
        pr = jax.nn.softmax(s, axis=-1)
        ctx = jnp.einsum('bhqk,bkhd->bqhd', pr, vh).reshape(B, L, E)
        attn = ctx @ lp["wo"] + lp["bo"]
        x = _layer_norm(x + attn, lp["g1"], lp["b1"])
        h1 = jnp.maximum(x @ lp["w1"] + lp["bf1"], 0.0)
        ff = h1 @ lp["w2"] + lp["bf2"]
        x = _layer_norm(x + ff, lp["g2"], lp["b2"])

    return x[:, 0, :] @ p["wout"] + p["bout"]


if __name__ == "__main__":
    key = jax.random.PRNGKey(0)
    kparam, kb, kl = jax.random.split(key, 3)
    params = init_params(kparam)
    kernel_params = prepare_params(params)

    B, N = 2, 8
    bbox = jax.random.uniform(kb, (B, N, 4), jnp.float32)
    label = jax.random.randint(kl, (B, N), 1, NUM_LABEL)
    padding_mask = jnp.zeros((B, N), dtype=bool).at[:, N - 2:].set(True)
    # padded slots carry padding_idx labels / zero boxes (as the data pipeline would)
    label = jnp.where(padding_mask, PADDING_IDX, label)
    bbox = jnp.where(padding_mask[..., None], 0.0, bbox)

    out = slide_encoder_forward(bbox, label, padding_mask, kernel_params)
    out = jax.block_until_ready(out)

    ref = reference_forward(bbox, label, padding_mask, params)
    assert out.shape == (B, DIM_SLIDE), out.shape
    max_err = float(jnp.max(jnp.abs(out - ref)))
    assert jnp.allclose(out, ref, atol=1e-4, rtol=1e-4), max_err
    print("KERNEL_OK")
</pallas_src>

<mosaic_0001>
module attributes {stable_mosaic.version = 11 : i64} {
  func.func @slide_encoder_kernel(%arg0: i32, %arg1: memref<1x9x4xf32, #tpu.memory_space<vmem>>, %arg2: memref<1x9x1xi32, #tpu.memory_space<vmem>>, %arg3: memref<1x1x9xf32, #tpu.memory_space<vmem>>, %arg4: memref<4x32xf32, #tpu.memory_space<vmem>>, %arg5: memref<16x32xf32, #tpu.memory_space<vmem>>, %arg6: memref<64x32xf32, #tpu.memory_space<vmem>>, %arg7: memref<32x32xf32, #tpu.memory_space<vmem>>, %arg8: memref<4x32xf32, #tpu.memory_space<vmem>>, %arg9: memref<2x32x96xf32, #tpu.memory_space<vmem>>, %arg10: memref<2x32x32xf32, #tpu.memory_space<vmem>>, %arg11: memref<2x32x16xf32, #tpu.memory_space<vmem>>, %arg12: memref<2x16x32xf32, #tpu.memory_space<vmem>>, %arg13: memref<2x8x96xf32, #tpu.memory_space<vmem>>, %arg14: memref<1x1x32xf32, #tpu.memory_space<vmem>>) attributes {dimension_semantics = [#tpu.dimension_semantics<parallel>], iteration_bounds = array<i64: 2>, scalar_prefetch = 0 : i64, scratch_operands = 0 : i64, tpu.core_type = #tpu.core_type<tc>, window_params = [{transform_indices = @transform_0, window_bounds = array<i64: 1, 9, 4>}, {transform_indices = @transform_1, window_bounds = array<i64: 1, 9, 1>}, {transform_indices = @transform_2, window_bounds = array<i64: 1, 1, 9>}, {pipeline_mode = #tpu.pipeline_mode<synchronous>, transform_indices = @transform_3, window_bounds = array<i64: 4, 32>}, {pipeline_mode = #tpu.pipeline_mode<synchronous>, transform_indices = @transform_4, window_bounds = array<i64: 16, 32>}, {pipeline_mode = #tpu.pipeline_mode<synchronous>, transform_indices = @transform_5, window_bounds = array<i64: 64, 32>}, {pipeline_mode = #tpu.pipeline_mode<synchronous>, transform_indices = @transform_6, window_bounds = array<i64: 32, 32>}, {pipeline_mode = #tpu.pipeline_mode<synchronous>, transform_indices = @transform_7, window_bounds = array<i64: 4, 32>}, {pipeline_mode = #tpu.pipeline_mode<synchronous>, transform_indices = @transform_8, window_bounds = array<i64: 2, 32, 96>}, {pipeline_mode = #tpu.pipeline_mode<synchronous>, transform_indices = @transform_9, window_bounds = array<i64: 2, 32, 32>}, {pipeline_mode = #tpu.pipeline_mode<synchronous>, transform_indices = @transform_10, window_bounds = array<i64: 2, 32, 16>}, {pipeline_mode = #tpu.pipeline_mode<synchronous>, transform_indices = @transform_11, window_bounds = array<i64: 2, 16, 32>}, {pipeline_mode = #tpu.pipeline_mode<synchronous>, transform_indices = @transform_12, window_bounds = array<i64: 2, 8, 96>}, {transform_indices = @transform_13, window_bounds = array<i64: 1, 1, 32>}]} {
    %c0 = arith.constant 0 : index
    %c0_0 = arith.constant 0 : index
    %c0_1 = arith.constant 0 : index
    %0 = vector.load %arg1[%c0, %c0_0, %c0_1] : memref<1x9x4xf32, #tpu.memory_space<vmem>>, vector<1x9x4xf32>
    %1 = vector.shape_cast %0 : vector<1x9x4xf32> to vector<9x4xf32>
    %c0_2 = arith.constant 0 : index
    %c0_3 = arith.constant 0 : index
    %c0_4 = arith.constant 0 : index
    %2 = vector.load %arg2[%c0_2, %c0_3, %c0_4] : memref<1x9x1xi32, #tpu.memory_space<vmem>>, vector<1x9x1xi32>
    %3 = vector.shape_cast %2 : vector<1x9x1xi32> to vector<9x1xi32>
    %4 = tpu.iota {dimensions = array<i32: 1>} : vector<9x16xi32>
    %5 = vector.broadcast %3 : vector<9x1xi32> to vector<9x16xi32>
    %6 = arith.cmpi eq, %5, %4 : vector<9x16xi32>
    %7 = arith.extui %6 : vector<9x16xi1> to vector<9x16xi32>
    %8 = arith.sitofp %7 : vector<9x16xi32> to vector<9x16xf32>
    %c0_5 = arith.constant 0 : index
    %c0_6 = arith.constant 0 : index
    %9 = vector.load %arg4[%c0_5, %c0_6] : memref<4x32xf32, #tpu.memory_space<vmem>>, vector<4x32xf32>
    %cst = arith.constant dense<0.000000e+00> : vector<9x32xf32>
    %10 = tpu.matmul %1, %9, %cst {dimension_numbers = #tpu.dot_dimension_numbers<[1], [0], [0], [1], [0, 0, 1, 1], [], []>} : vector<9x4xf32>, vector<4x32xf32>, vector<9x32xf32> -> vector<9x32xf32>
    %c1 = arith.constant 1 : index
    %c0_7 = arith.constant 0 : index
    %11 = vector.load %arg8[%c1, %c0_7] : memref<4x32xf32, #tpu.memory_space<vmem>>, vector<1x32xf32>
    %12 = vector.broadcast %11 : vector<1x32xf32> to vector<9x32xf32>
    %13 = arith.addf %10, %12 : vector<9x32xf32>
    %c0_8 = arith.constant 0 : index
    %c0_9 = arith.constant 0 : index
    %14 = vector.load %arg5[%c0_8, %c0_9] : memref<16x32xf32, #tpu.memory_space<vmem>>, vector<16x32xf32>
    %cst_10 = arith.constant dense<0.000000e+00> : vector<9x32xf32>
    %15 = tpu.matmul %8, %14, %cst_10 {dimension_numbers = #tpu.dot_dimension_numbers<[1], [0], [0], [1], [0, 0, 1, 1], [], []>} : vector<9x16xf32>, vector<16x32xf32>, vector<9x32xf32> -> vector<9x32xf32>
    %c0_11 = arith.constant 0 : index
    %c0_12 = arith.constant 0 : index
    %16 = vector.load %arg6[%c0_11, %c0_12] : memref<64x32xf32, #tpu.memory_space<vmem>>, vector<64x32xf32>
    %17 = vector.extract_strided_slice %16 {offsets = [0, 0], sizes = [32, 32], strides = [1, 1]} : vector<64x32xf32> to vector<32x32xf32>
    %cst_13 = arith.constant dense<0.000000e+00> : vector<9x32xf32>
    %18 = tpu.matmul %13, %17, %cst_13 {dimension_numbers = #tpu.dot_dimension_numbers<[1], [0], [0], [1], [0, 0, 1, 1], [], []>} : vector<9x32xf32>, vector<32x32xf32>, vector<9x32xf32> -> vector<9x32xf32>
    %19 = vector.extract_strided_slice %16 {offsets = [32, 0], sizes = [32, 32], strides = [1, 1]} : vector<64x32xf32> to vector<32x32xf32>
    %cst_14 = arith.constant dense<0.000000e+00> : vector<9x32xf32>
    %20 = tpu.matmul %15, %19, %cst_14 {dimension_numbers = #tpu.dot_dimension_numbers<[1], [0], [0], [1], [0, 0, 1, 1], [], []>} : vector<9x32xf32>, vector<32x32xf32>, vector<9x32xf32> -> vector<9x32xf32>
    %21 = arith.addf %18, %20 : vector<9x32xf32>
    %c2 = arith.constant 2 : index
    %c0_15 = arith.constant 0 : index
    %22 = vector.load %arg8[%c2, %c0_15] : memref<4x32xf32, #tpu.memory_space<vmem>>, vector<1x32xf32>
    %23 = vector.broadcast %22 : vector<1x32xf32> to vector<9x32xf32>
    %24 = arith.addf %21, %23 : vector<9x32xf32>
    %cst_16 = arith.constant 0.000000e+00 : f32
    %25 = vector.broadcast %cst_16 : f32 to vector<9x32xf32>
    %26 = arith.cmpf ogt, %24, %25 : vector<9x32xf32>
    %cst_17 = arith.constant 0.00999999977 : f32
    %27 = vector.broadcast %cst_17 : f32 to vector<9x32xf32>
    %28 = arith.mulf %27, %24 : vector<9x32xf32>
    %29 = arith.select %26, %24, %28 : vector<9x32xi1>, vector<9x32xf32>
    %30 = tpu.iota {dimensions = array<i32: 0>} : vector<9x1xi32>
    %c0_i32 = arith.constant 0 : i32
    %31 = vector.broadcast %c0_i32 : i32 to vector<9x1xi32>
    %32 = arith.cmpi eq, %30, %31 : vector<9x1xi32>
    %c0_18 = arith.constant 0 : index
    %c0_19 = arith.constant 0 : index
    %33 = vector.load %arg8[%c0_18, %c0_19] : memref<4x32xf32, #tpu.memory_space<vmem>>, vector<1x32xf32>
    %34 = vector.shape_cast %32 : vector<9x1xi1> to vector<9x1xi1>
    %35 = vector.broadcast %34 : vector<9x1xi1> to vector<9x32xi1>
    %36 = vector.shape_cast %33 : vector<1x32xf32> to vector<1x32xf32>
    %37 = vector.broadcast %36 : vector<1x32xf32> to vector<9x32xf32>
    %38 = arith.select %35, %37, %29 : vector<9x32xi1>, vector<9x32xf32>
    %c0_20 = arith.constant 0 : index
    %c0_21 = arith.constant 0 : index
    %c0_22 = arith.constant 0 : index
    %39 = vector.load %arg3[%c0_20, %c0_21, %c0_22] : memref<1x1x9xf32, #tpu.memory_space<vmem>>, vector<1x1x9xf32>
    %40 = vector.shape_cast %39 : vector<1x1x9xf32> to vector<1x9xf32>
    %c0_23 = arith.constant 0 : index
    %c0_24 = arith.constant 0 : index
    %c0_25 = arith.constant 0 : index
    %41 = vector.load %arg13[%c0_23, %c0_24, %c0_25] : memref<2x8x96xf32, #tpu.memory_space<vmem>>, vector<1x8x96xf32>
    %42 = vector.shape_cast %41 : vector<1x8x96xf32> to vector<8x96xf32>
    %c0_26 = arith.constant 0 : index
    %c0_27 = arith.constant 0 : index
    %c0_28 = arith.constant 0 : index
    %43 = vector.load %arg10[%c0_26, %c0_27, %c0_28] : memref<2x32x32xf32, #tpu.memory_space<vmem>>, vector<1x32x32xf32>
    %44 = vector.shape_cast %43 : vector<1x32x32xf32> to vector<32x32xf32>
    %c0_29 = arith.constant 0 : index
    %c0_30 = arith.constant 0 : index
    %c0_31 = arith.constant 0 : index
    %45 = vector.load %arg9[%c0_29, %c0_30, %c0_31] : memref<2x32x96xf32, #tpu.memory_space<vmem>>, vector<1x32x96xf32>
    %46 = vector.shape_cast %45 : vector<1x32x96xf32> to vector<32x96xf32>
    %cst_32 = arith.constant dense<0.000000e+00> : vector<9x96xf32>
    %47 = tpu.matmul %38, %46, %cst_32 {dimension_numbers = #tpu.dot_dimension_numbers<[1], [0], [0], [1], [0, 0, 1, 1], [], []>} : vector<9x32xf32>, vector<32x96xf32>, vector<9x96xf32> -> vector<9x96xf32>
    %48 = vector.extract_strided_slice %42 {offsets = [0, 0], sizes = [1, 96], strides = [1, 1]} : vector<8x96xf32> to vector<1x96xf32>
    %49 = vector.broadcast %48 : vector<1x96xf32> to vector<9x96xf32>
    %50 = arith.addf %47, %49 : vector<9x96xf32>
    %cst_33 = arith.constant 0.000000e+00 : f32
    %51 = vector.broadcast %cst_33 : f32 to vector<9x32xf32>
    %52 = vector.extract_strided_slice %50 {offsets = [0, 0], sizes = [9, 8], strides = [1, 1]} : vector<9x96xf32> to vector<9x8xf32>
    %53 = vector.extract_strided_slice %50 {offsets = [0, 32], sizes = [9, 8], strides = [1, 1]} : vector<9x96xf32> to vector<9x8xf32>
    %54 = vector.extract_strided_slice %50 {offsets = [0, 64], sizes = [9, 8], strides = [1, 1]} : vector<9x96xf32> to vector<9x8xf32>
    %55 = tpu.transpose %53, [1, 0] : vector<9x8xf32> -> vector<8x9xf32>
    %cst_34 = arith.constant dense<0.000000e+00> : vector<9x9xf32>
    %56 = tpu.matmul %52, %55, %cst_34 {dimension_numbers = #tpu.dot_dimension_numbers<[1], [0], [0], [1], [0, 0, 1, 1], [], []>} : vector<9x8xf32>, vector<8x9xf32>, vector<9x9xf32> -> vector<9x9xf32>
    %57 = vector.broadcast %40 : vector<1x9xf32> to vector<9x9xf32>
    %58 = arith.addf %56, %57 : vector<9x9xf32>
    %cst_35 = arith.constant dense<0xFF800000> : vector<9xf32>
    %59 = vector.multi_reduction <maximumf>, %58, %cst_35 [1] : vector<9x9xf32> to vector<9xf32>
    %60 = vector.shape_cast %59 : vector<9xf32> to vector<9x1xf32>
    %61 = vector.broadcast %60 : vector<9x1xf32> to vector<9x9xf32>
    %62 = arith.subf %58, %61 : vector<9x9xf32>
    %63 = math.exp %62 : vector<9x9xf32>
    %cst_36 = arith.constant dense<0.000000e+00> : vector<9xf32>
    %64 = vector.multi_reduction <add>, %63, %cst_36 [1] : vector<9x9xf32> to vector<9xf32>
    %65 = vector.shape_cast %64 : vector<9xf32> to vector<9x1xf32>
    %66 = vector.broadcast %65 : vector<9x1xf32> to vector<9x9xf32>
    %67 = arith.divf %63, %66 : vector<9x9xf32>
    %cst_37 = arith.constant dense<0.000000e+00> : vector<9x8xf32>
    %68 = tpu.matmul %67, %54, %cst_37 {dimension_numbers = #tpu.dot_dimension_numbers<[1], [0], [0], [1], [0, 0, 1, 1], [], []>} : vector<9x9xf32>, vector<9x8xf32>, vector<9x8xf32> -> vector<9x8xf32>
    %69 = vector.extract_strided_slice %44 {offsets = [0, 0], sizes = [8, 32], strides = [1, 1]} : vector<32x32xf32> to vector<8x32xf32>
    %cst_38 = arith.constant dense<0.000000e+00> : vector<9x32xf32>
    %70 = tpu.matmul %68, %69, %cst_38 {dimension_numbers = #tpu.dot_dimension_numbers<[1], [0], [0], [1], [0, 0, 1, 1], [], []>} : vector<9x8xf32>, vector<8x32xf32>, vector<9x32xf32> -> vector<9x32xf32>
    %71 = arith.addf %51, %70 : vector<9x32xf32>
    %72 = vector.extract_strided_slice %50 {offsets = [0, 8], sizes = [9, 8], strides = [1, 1]} : vector<9x96xf32> to vector<9x8xf32>
    %73 = vector.extract_strided_slice %50 {offsets = [0, 40], sizes = [9, 8], strides = [1, 1]} : vector<9x96xf32> to vector<9x8xf32>
    %74 = vector.extract_strided_slice %50 {offsets = [0, 72], sizes = [9, 8], strides = [1, 1]} : vector<9x96xf32> to vector<9x8xf32>
    %75 = tpu.transpose %73, [1, 0] : vector<9x8xf32> -> vector<8x9xf32>
    %cst_39 = arith.constant dense<0.000000e+00> : vector<9x9xf32>
    %76 = tpu.matmul %72, %75, %cst_39 {dimension_numbers = #tpu.dot_dimension_numbers<[1], [0], [0], [1], [0, 0, 1, 1], [], []>} : vector<9x8xf32>, vector<8x9xf32>, vector<9x9xf32> -> vector<9x9xf32>
    %77 = vector.broadcast %40 : vector<1x9xf32> to vector<9x9xf32>
    %78 = arith.addf %76, %77 : vector<9x9xf32>
    %cst_40 = arith.constant dense<0xFF800000> : vector<9xf32>
    %79 = vector.multi_reduction <maximumf>, %78, %cst_40 [1] : vector<9x9xf32> to vector<9xf32>
    %80 = vector.shape_cast %79 : vector<9xf32> to vector<9x1xf32>
    %81 = vector.broadcast %80 : vector<9x1xf32> to vector<9x9xf32>
    %82 = arith.subf %78, %81 : vector<9x9xf32>
    %83 = math.exp %82 : vector<9x9xf32>
    %cst_41 = arith.constant dense<0.000000e+00> : vector<9xf32>
    %84 = vector.multi_reduction <add>, %83, %cst_41 [1] : vector<9x9xf32> to vector<9xf32>
    %85 = vector.shape_cast %84 : vector<9xf32> to vector<9x1xf32>
    %86 = vector.broadcast %85 : vector<9x1xf32> to vector<9x9xf32>
    %87 = arith.divf %83, %86 : vector<9x9xf32>
    %cst_42 = arith.constant dense<0.000000e+00> : vector<9x8xf32>
    %88 = tpu.matmul %87, %74, %cst_42 {dimension_numbers = #tpu.dot_dimension_numbers<[1], [0], [0], [1], [0, 0, 1, 1], [], []>} : vector<9x9xf32>, vector<9x8xf32>, vector<9x8xf32> -> vector<9x8xf32>
    %89 = vector.extract_strided_slice %44 {offsets = [8, 0], sizes = [8, 32], strides = [1, 1]} : vector<32x32xf32> to vector<8x32xf32>
    %cst_43 = arith.constant dense<0.000000e+00> : vector<9x32xf32>
    %90 = tpu.matmul %88, %89, %cst_43 {dimension_numbers = #tpu.dot_dimension_numbers<[1], [0], [0], [1], [0, 0, 1, 1], [], []>} : vector<9x8xf32>, vector<8x32xf32>, vector<9x32xf32> -> vector<9x32xf32>
    %91 = arith.addf %71, %90 : vector<9x32xf32>
    %92 = vector.extract_strided_slice %50 {offsets = [0, 16], sizes = [9, 8], strides = [1, 1]} : vector<9x96xf32> to vector<9x8xf32>
    %93 = vector.extract_strided_slice %50 {offsets = [0, 48], sizes = [9, 8], strides = [1, 1]} : vector<9x96xf32> to vector<9x8xf32>
    %94 = vector.extract_strided_slice %50 {offsets = [0, 80], sizes = [9, 8], strides = [1, 1]} : vector<9x96xf32> to vector<9x8xf32>
    %95 = tpu.transpose %93, [1, 0] : vector<9x8xf32> -> vector<8x9xf32>
    %cst_44 = arith.constant dense<0.000000e+00> : vector<9x9xf32>
    %96 = tpu.matmul %92, %95, %cst_44 {dimension_numbers = #tpu.dot_dimension_numbers<[1], [0], [0], [1], [0, 0, 1, 1], [], []>} : vector<9x8xf32>, vector<8x9xf32>, vector<9x9xf32> -> vector<9x9xf32>
    %97 = vector.broadcast %40 : vector<1x9xf32> to vector<9x9xf32>
    %98 = arith.addf %96, %97 : vector<9x9xf32>
    %cst_45 = arith.constant dense<0xFF800000> : vector<9xf32>
    %99 = vector.multi_reduction <maximumf>, %98, %cst_45 [1] : vector<9x9xf32> to vector<9xf32>
    %100 = vector.shape_cast %99 : vector<9xf32> to vector<9x1xf32>
    %101 = vector.broadcast %100 : vector<9x1xf32> to vector<9x9xf32>
    %102 = arith.subf %98, %101 : vector<9x9xf32>
    %103 = math.exp %102 : vector<9x9xf32>
    %cst_46 = arith.constant dense<0.000000e+00> : vector<9xf32>
    %104 = vector.multi_reduction <add>, %103, %cst_46 [1] : vector<9x9xf32> to vector<9xf32>
    %105 = vector.shape_cast %104 : vector<9xf32> to vector<9x1xf32>
    %106 = vector.broadcast %105 : vector<9x1xf32> to vector<9x9xf32>
    %107 = arith.divf %103, %106 : vector<9x9xf32>
    %cst_47 = arith.constant dense<0.000000e+00> : vector<9x8xf32>
    %108 = tpu.matmul %107, %94, %cst_47 {dimension_numbers = #tpu.dot_dimension_numbers<[1], [0], [0], [1], [0, 0, 1, 1], [], []>} : vector<9x9xf32>, vector<9x8xf32>, vector<9x8xf32> -> vector<9x8xf32>
    %109 = vector.extract_strided_slice %44 {offsets = [16, 0], sizes = [8, 32], strides = [1, 1]} : vector<32x32xf32> to vector<8x32xf32>
    %cst_48 = arith.constant dense<0.000000e+00> : vector<9x32xf32>
    %110 = tpu.matmul %108, %109, %cst_48 {dimension_numbers = #tpu.dot_dimension_numbers<[1], [0], [0], [1], [0, 0, 1, 1], [], []>} : vector<9x8xf32>, vector<8x32xf32>, vector<9x32xf32> -> vector<9x32xf32>
    %111 = arith.addf %91, %110 : vector<9x32xf32>
    %112 = vector.extract_strided_slice %50 {offsets = [0, 24], sizes = [9, 8], strides = [1, 1]} : vector<9x96xf32> to vector<9x8xf32>
    %113 = vector.extract_strided_slice %50 {offsets = [0, 56], sizes = [9, 8], strides = [1, 1]} : vector<9x96xf32> to vector<9x8xf32>
    %114 = vector.extract_strided_slice %50 {offsets = [0, 88], sizes = [9, 8], strides = [1, 1]} : vector<9x96xf32> to vector<9x8xf32>
    %115 = tpu.transpose %113, [1, 0] : vector<9x8xf32> -> vector<8x9xf32>
    %cst_49 = arith.constant dense<0.000000e+00> : vector<9x9xf32>
    %116 = tpu.matmul %112, %115, %cst_49 {dimension_numbers = #tpu.dot_dimension_numbers<[1], [0], [0], [1], [0, 0, 1, 1], [], []>} : vector<9x8xf32>, vector<8x9xf32>, vector<9x9xf32> -> vector<9x9xf32>
    %117 = vector.broadcast %40 : vector<1x9xf32> to vector<9x9xf32>
    %118 = arith.addf %116, %117 : vector<9x9xf32>
    %cst_50 = arith.constant dense<0xFF800000> : vector<9xf32>
    %119 = vector.multi_reduction <maximumf>, %118, %cst_50 [1] : vector<9x9xf32> to vector<9xf32>
    %120 = vector.shape_cast %119 : vector<9xf32> to vector<9x1xf32>
    %121 = vector.broadcast %120 : vector<9x1xf32> to vector<9x9xf32>
    %122 = arith.subf %118, %121 : vector<9x9xf32>
    %123 = math.exp %122 : vector<9x9xf32>
    %cst_51 = arith.constant dense<0.000000e+00> : vector<9xf32>
    %124 = vector.multi_reduction <add>, %123, %cst_51 [1] : vector<9x9xf32> to vector<9xf32>
    %125 = vector.shape_cast %124 : vector<9xf32> to vector<9x1xf32>
    %126 = vector.broadcast %125 : vector<9x1xf32> to vector<9x9xf32>
    %127 = arith.divf %123, %126 : vector<9x9xf32>
    %cst_52 = arith.constant dense<0.000000e+00> : vector<9x8xf32>
    %128 = tpu.matmul %127, %114, %cst_52 {dimension_numbers = #tpu.dot_dimension_numbers<[1], [0], [0], [1], [0, 0, 1, 1], [], []>} : vector<9x9xf32>, vector<9x8xf32>, vector<9x8xf32> -> vector<9x8xf32>
    %129 = vector.extract_strided_slice %44 {offsets = [24, 0], sizes = [8, 32], strides = [1, 1]} : vector<32x32xf32> to vector<8x32xf32>
    %cst_53 = arith.constant dense<0.000000e+00> : vector<9x32xf32>
    %130 = tpu.matmul %128, %129, %cst_53 {dimension_numbers = #tpu.dot_dimension_numbers<[1], [0], [0], [1], [0, 0, 1, 1], [], []>} : vector<9x8xf32>, vector<8x32xf32>, vector<9x32xf32> -> vector<9x32xf32>
    %131 = arith.addf %111, %130 : vector<9x32xf32>
    %132 = vector.extract_strided_slice %42 {offsets = [1, 0], sizes = [1, 32], strides = [1, 1]} : vector<8x96xf32> to vector<1x32xf32>
    %133 = vector.broadcast %132 : vector<1x32xf32> to vector<9x32xf32>
    %134 = arith.addf %131, %133 : vector<9x32xf32>
    %135 = arith.addf %38, %134 : vector<9x32xf32>
    %136 = vector.extract_strided_slice %42 {offsets = [2, 0], sizes = [1, 32], strides = [1, 1]} : vector<8x96xf32> to vector<1x32xf32>
    %137 = vector.extract_strided_slice %42 {offsets = [3, 0], sizes = [1, 32], strides = [1, 1]} : vector<8x96xf32> to vector<1x32xf32>
    %cst_54 = arith.constant dense<0.000000e+00> : vector<9xf32>
    %138 = vector.multi_reduction <add>, %135, %cst_54 [1] : vector<9x32xf32> to vector<9xf32>
    %139 = vector.shape_cast %138 : vector<9xf32> to vector<9x1xf32>
    %cst_55 = arith.constant 3.200000e+01 : f32
    %140 = vector.broadcast %cst_55 : f32 to vector<9x1xf32>
    %141 = arith.divf %139, %140 : vector<9x1xf32>
    %142 = vector.broadcast %141 : vector<9x1xf32> to vector<9x32xf32>
    %143 = arith.subf %135, %142 : vector<9x32xf32>
    %144 = arith.mulf %143, %143 : vector<9x32xf32>
    %cst_56 = arith.constant dense<0.000000e+00> : vector<9xf32>
    %145 = vector.multi_reduction <add>, %144, %cst_56 [1] : vector<9x32xf32> to vector<9xf32>
    %146 = vector.shape_cast %145 : vector<9xf32> to vector<9x1xf32>
    %cst_57 = arith.constant 3.200000e+01 : f32
    %147 = vector.broadcast %cst_57 : f32 to vector<9x1xf32>
    %148 = arith.divf %146, %147 : vector<9x1xf32>
    %149 = vector.broadcast %141 : vector<9x1xf32> to vector<9x32xf32>
    %150 = arith.subf %135, %149 : vector<9x32xf32>
    %cst_58 = arith.constant 9.99999974E-6 : f32
    %151 = vector.broadcast %cst_58 : f32 to vector<9x1xf32>
    %152 = arith.addf %148, %151 : vector<9x1xf32>
    %153 = math.rsqrt %152 : vector<9x1xf32>
    %154 = vector.broadcast %153 : vector<9x1xf32> to vector<9x32xf32>
    %155 = arith.mulf %150, %154 : vector<9x32xf32>
    %156 = vector.broadcast %136 : vector<1x32xf32> to vector<9x32xf32>
    %157 = arith.mulf %155, %156 : vector<9x32xf32>
    %158 = vector.broadcast %137 : vector<1x32xf32> to vector<9x32xf32>
    %159 = arith.addf %157, %158 : vector<9x32xf32>
    %c0_59 = arith.constant 0 : index
    %c0_60 = arith.constant 0 : index
    %c0_61 = arith.constant 0 : index
    %160 = vector.load %arg11[%c0_59, %c0_60, %c0_61] : memref<2x32x16xf32, #tpu.memory_space<vmem>>, vector<1x32x16xf32>
    %161 = vector.shape_cast %160 : vector<1x32x16xf32> to vector<32x16xf32>
    %cst_62 = arith.constant dense<0.000000e+00> : vector<9x16xf32>
    %162 = tpu.matmul %159, %161, %cst_62 {dimension_numbers = #tpu.dot_dimension_numbers<[1], [0], [0], [1], [0, 0, 1, 1], [], []>} : vector<9x32xf32>, vector<32x16xf32>, vector<9x16xf32> -> vector<9x16xf32>
    %163 = vector.extract_strided_slice %42 {offsets = [4, 0], sizes = [1, 16], strides = [1, 1]} : vector<8x96xf32> to vector<1x16xf32>
    %164 = vector.broadcast %163 : vector<1x16xf32> to vector<9x16xf32>
    %165 = arith.addf %162, %164 : vector<9x16xf32>
    %cst_63 = arith.constant 0.000000e+00 : f32
    %166 = vector.broadcast %cst_63 : f32 to vector<9x16xf32>
    %167 = arith.maximumf %165, %166 : vector<9x16xf32>
    %c0_64 = arith.constant 0 : index
    %c0_65 = arith.constant 0 : index
    %c0_66 = arith.constant 0 : index
    %168 = vector.load %arg12[%c0_64, %c0_65, %c0_66] : memref<2x16x32xf32, #tpu.memory_space<vmem>>, vector<1x16x32xf32>
    %169 = vector.shape_cast %168 : vector<1x16x32xf32> to vector<16x32xf32>
    %cst_67 = arith.constant dense<0.000000e+00> : vector<9x32xf32>
    %170 = tpu.matmul %167, %169, %cst_67 {dimension_numbers = #tpu.dot_dimension_numbers<[1], [0], [0], [1], [0, 0, 1, 1], [], []>} : vector<9x16xf32>, vector<16x32xf32>, vector<9x32xf32> -> vector<9x32xf32>
    %171 = vector.extract_strided_slice %42 {offsets = [5, 0], sizes = [1, 32], strides = [1, 1]} : vector<8x96xf32> to vector<1x32xf32>
    %172 = vector.broadcast %171 : vector<1x32xf32> to vector<9x32xf32>
    %173 = arith.addf %170, %172 : vector<9x32xf32>
    %174 = arith.addf %159, %173 : vector<9x32xf32>
    %175 = vector.extract_strided_slice %42 {offsets = [6, 0], sizes = [1, 32], strides = [1, 1]} : vector<8x96xf32> to vector<1x32xf32>
    %176 = vector.extract_strided_slice %42 {offsets = [7, 0], sizes = [1, 32], strides = [1, 1]} : vector<8x96xf32> to vector<1x32xf32>
    %cst_68 = arith.constant dense<0.000000e+00> : vector<9xf32>
    %177 = vector.multi_reduction <add>, %174, %cst_68 [1] : vector<9x32xf32> to vector<9xf32>
    %178 = vector.shape_cast %177 : vector<9xf32> to vector<9x1xf32>
    %cst_69 = arith.constant 3.200000e+01 : f32
    %179 = vector.broadcast %cst_69 : f32 to vector<9x1xf32>
    %180 = arith.divf %178, %179 : vector<9x1xf32>
    %181 = vector.broadcast %180 : vector<9x1xf32> to vector<9x32xf32>
    %182 = arith.subf %174, %181 : vector<9x32xf32>
    %183 = arith.mulf %182, %182 : vector<9x32xf32>
    %cst_70 = arith.constant dense<0.000000e+00> : vector<9xf32>
    %184 = vector.multi_reduction <add>, %183, %cst_70 [1] : vector<9x32xf32> to vector<9xf32>
    %185 = vector.shape_cast %184 : vector<9xf32> to vector<9x1xf32>
    %cst_71 = arith.constant 3.200000e+01 : f32
    %186 = vector.broadcast %cst_71 : f32 to vector<9x1xf32>
    %187 = arith.divf %185, %186 : vector<9x1xf32>
    %188 = vector.broadcast %180 : vector<9x1xf32> to vector<9x32xf32>
    %189 = arith.subf %174, %188 : vector<9x32xf32>
    %cst_72 = arith.constant 9.99999974E-6 : f32
    %190 = vector.broadcast %cst_72 : f32 to vector<9x1xf32>
    %191 = arith.addf %187, %190 : vector<9x1xf32>
    %192 = math.rsqrt %191 : vector<9x1xf32>
    %193 = vector.broadcast %192 : vector<9x1xf32> to vector<9x32xf32>
    %194 = arith.mulf %189, %193 : vector<9x32xf32>
    %195 = vector.broadcast %175 : vector<1x32xf32> to vector<9x32xf32>
    %196 = arith.mulf %194, %195 : vector<9x32xf32>
    %197 = vector.broadcast %176 : vector<1x32xf32> to vector<9x32xf32>
    %198 = arith.addf %196, %197 : vector<9x32xf32>
    %c1_73 = arith.constant 1 : index
    %c0_74 = arith.constant 0 : index
    %c0_75 = arith.constant 0 : index
    %199 = vector.load %arg13[%c1_73, %c0_74, %c0_75] : memref<2x8x96xf32, #tpu.memory_space<vmem>>, vector<1x8x96xf32>
    %200 = vector.shape_cast %199 : vector<1x8x96xf32> to vector<8x96xf32>
    %c1_76 = arith.constant 1 : index
    %c0_77 = arith.constant 0 : index
    %c0_78 = arith.constant 0 : index
    %201 = vector.load %arg10[%c1_76, %c0_77, %c0_78] : memref<2x32x32xf32, #tpu.memory_space<vmem>>, vector<1x32x32xf32>
    %202 = vector.shape_cast %201 : vector<1x32x32xf32> to vector<32x32xf32>
    %c1_79 = arith.constant 1 : index
    %c0_80 = arith.constant 0 : index
    %c0_81 = arith.constant 0 : index
    %203 = vector.load %arg9[%c1_79, %c0_80, %c0_81] : memref<2x32x96xf32, #tpu.memory_space<vmem>>, vector<1x32x96xf32>
    %204 = vector.shape_cast %203 : vector<1x32x96xf32> to vector<32x96xf32>
    %cst_82 = arith.constant dense<0.000000e+00> : vector<9x96xf32>
    %205 = tpu.matmul %198, %204, %cst_82 {dimension_numbers = #tpu.dot_dimension_numbers<[1], [0], [0], [1], [0, 0, 1, 1], [], []>} : vector<9x32xf32>, vector<32x96xf32>, vector<9x96xf32> -> vector<9x96xf32>
    %206 = vector.extract_strided_slice %200 {offsets = [0, 0], sizes = [1, 96], strides = [1, 1]} : vector<8x96xf32> to vector<1x96xf32>
    %207 = vector.broadcast %206 : vector<1x96xf32> to vector<9x96xf32>
    %208 = arith.addf %205, %207 : vector<9x96xf32>
    %cst_83 = arith.constant 0.000000e+00 : f32
    %209 = vector.broadcast %cst_83 : f32 to vector<9x32xf32>
    %210 = vector.extract_strided_slice %208 {offsets = [0, 0], sizes = [9, 8], strides = [1, 1]} : vector<9x96xf32> to vector<9x8xf32>
    %211 = vector.extract_strided_slice %208 {offsets = [0, 32], sizes = [9, 8], strides = [1, 1]} : vector<9x96xf32> to vector<9x8xf32>
    %212 = vector.extract_strided_slice %208 {offsets = [0, 64], sizes = [9, 8], strides = [1, 1]} : vector<9x96xf32> to vector<9x8xf32>
    %213 = tpu.transpose %211, [1, 0] : vector<9x8xf32> -> vector<8x9xf32>
    %cst_84 = arith.constant dense<0.000000e+00> : vector<9x9xf32>
    %214 = tpu.matmul %210, %213, %cst_84 {dimension_numbers = #tpu.dot_dimension_numbers<[1], [0], [0], [1], [0, 0, 1, 1], [], []>} : vector<9x8xf32>, vector<8x9xf32>, vector<9x9xf32> -> vector<9x9xf32>
    %215 = vector.broadcast %40 : vector<1x9xf32> to vector<9x9xf32>
    %216 = arith.addf %214, %215 : vector<9x9xf32>
    %cst_85 = arith.constant dense<0xFF800000> : vector<9xf32>
    %217 = vector.multi_reduction <maximumf>, %216, %cst_85 [1] : vector<9x9xf32> to vector<9xf32>
    %218 = vector.shape_cast %217 : vector<9xf32> to vector<9x1xf32>
    %219 = vector.broadcast %218 : vector<9x1xf32> to vector<9x9xf32>
    %220 = arith.subf %216, %219 : vector<9x9xf32>
    %221 = math.exp %220 : vector<9x9xf32>
    %cst_86 = arith.constant dense<0.000000e+00> : vector<9xf32>
    %222 = vector.multi_reduction <add>, %221, %cst_86 [1] : vector<9x9xf32> to vector<9xf32>
    %223 = vector.shape_cast %222 : vector<9xf32> to vector<9x1xf32>
    %224 = vector.broadcast %223 : vector<9x1xf32> to vector<9x9xf32>
    %225 = arith.divf %221, %224 : vector<9x9xf32>
    %cst_87 = arith.constant dense<0.000000e+00> : vector<9x8xf32>
    %226 = tpu.matmul %225, %212, %cst_87 {dimension_numbers = #tpu.dot_dimension_numbers<[1], [0], [0], [1], [0, 0, 1, 1], [], []>} : vector<9x9xf32>, vector<9x8xf32>, vector<9x8xf32> -> vector<9x8xf32>
    %227 = vector.extract_strided_slice %202 {offsets = [0, 0], sizes = [8, 32], strides = [1, 1]} : vector<32x32xf32> to vector<8x32xf32>
    %cst_88 = arith.constant dense<0.000000e+00> : vector<9x32xf32>
    %228 = tpu.matmul %226, %227, %cst_88 {dimension_numbers = #tpu.dot_dimension_numbers<[1], [0], [0], [1], [0, 0, 1, 1], [], []>} : vector<9x8xf32>, vector<8x32xf32>, vector<9x32xf32> -> vector<9x32xf32>
    %229 = arith.addf %209, %228 : vector<9x32xf32>
    %230 = vector.extract_strided_slice %208 {offsets = [0, 8], sizes = [9, 8], strides = [1, 1]} : vector<9x96xf32> to vector<9x8xf32>
    %231 = vector.extract_strided_slice %208 {offsets = [0, 40], sizes = [9, 8], strides = [1, 1]} : vector<9x96xf32> to vector<9x8xf32>
    %232 = vector.extract_strided_slice %208 {offsets = [0, 72], sizes = [9, 8], strides = [1, 1]} : vector<9x96xf32> to vector<9x8xf32>
    %233 = tpu.transpose %231, [1, 0] : vector<9x8xf32> -> vector<8x9xf32>
    %cst_89 = arith.constant dense<0.000000e+00> : vector<9x9xf32>
    %234 = tpu.matmul %230, %233, %cst_89 {dimension_numbers = #tpu.dot_dimension_numbers<[1], [0], [0], [1], [0, 0, 1, 1], [], []>} : vector<9x8xf32>, vector<8x9xf32>, vector<9x9xf32> -> vector<9x9xf32>
    %235 = vector.broadcast %40 : vector<1x9xf32> to vector<9x9xf32>
    %236 = arith.addf %234, %235 : vector<9x9xf32>
    %cst_90 = arith.constant dense<0xFF800000> : vector<9xf32>
    %237 = vector.multi_reduction <maximumf>, %236, %cst_90 [1] : vector<9x9xf32> to vector<9xf32>
    %238 = vector.shape_cast %237 : vector<9xf32> to vector<9x1xf32>
    %239 = vector.broadcast %238 : vector<9x1xf32> to vector<9x9xf32>
    %240 = arith.subf %236, %239 : vector<9x9xf32>
    %241 = math.exp %240 : vector<9x9xf32>
    %cst_91 = arith.constant dense<0.000000e+00> : vector<9xf32>
    %242 = vector.multi_reduction <add>, %241, %cst_91 [1] : vector<9x9xf32> to vector<9xf32>
    %243 = vector.shape_cast %242 : vector<9xf32> to vector<9x1xf32>
    %244 = vector.broadcast %243 : vector<9x1xf32> to vector<9x9xf32>
    %245 = arith.divf %241, %244 : vector<9x9xf32>
    %cst_92 = arith.constant dense<0.000000e+00> : vector<9x8xf32>
    %246 = tpu.matmul %245, %232, %cst_92 {dimension_numbers = #tpu.dot_dimension_numbers<[1], [0], [0], [1], [0, 0, 1, 1], [], []>} : vector<9x9xf32>, vector<9x8xf32>, vector<9x8xf32> -> vector<9x8xf32>
    %247 = vector.extract_strided_slice %202 {offsets = [8, 0], sizes = [8, 32], strides = [1, 1]} : vector<32x32xf32> to vector<8x32xf32>
    %cst_93 = arith.constant dense<0.000000e+00> : vector<9x32xf32>
    %248 = tpu.matmul %246, %247, %cst_93 {dimension_numbers = #tpu.dot_dimension_numbers<[1], [0], [0], [1], [0, 0, 1, 1], [], []>} : vector<9x8xf32>, vector<8x32xf32>, vector<9x32xf32> -> vector<9x32xf32>
    %249 = arith.addf %229, %248 : vector<9x32xf32>
    %250 = vector.extract_strided_slice %208 {offsets = [0, 16], sizes = [9, 8], strides = [1, 1]} : vector<9x96xf32> to vector<9x8xf32>
    %251 = vector.extract_strided_slice %208 {offsets = [0, 48], sizes = [9, 8], strides = [1, 1]} : vector<9x96xf32> to vector<9x8xf32>
    %252 = vector.extract_strided_slice %208 {offsets = [0, 80], sizes = [9, 8], strides = [1, 1]} : vector<9x96xf32> to vector<9x8xf32>
    %253 = tpu.transpose %251, [1, 0] : vector<9x8xf32> -> vector<8x9xf32>
    %cst_94 = arith.constant dense<0.000000e+00> : vector<9x9xf32>
    %254 = tpu.matmul %250, %253, %cst_94 {dimension_numbers = #tpu.dot_dimension_numbers<[1], [0], [0], [1], [0, 0, 1, 1], [], []>} : vector<9x8xf32>, vector<8x9xf32>, vector<9x9xf32> -> vector<9x9xf32>
    %255 = vector.broadcast %40 : vector<1x9xf32> to vector<9x9xf32>
    %256 = arith.addf %254, %255 : vector<9x9xf32>
    %cst_95 = arith.constant dense<0xFF800000> : vector<9xf32>
    %257 = vector.multi_reduction <maximumf>, %256, %cst_95 [1] : vector<9x9xf32> to vector<9xf32>
    %258 = vector.shape_cast %257 : vector<9xf32> to vector<9x1xf32>
    %259 = vector.broadcast %258 : vector<9x1xf32> to vector<9x9xf32>
    %260 = arith.subf %256, %259 : vector<9x9xf32>
    %261 = math.exp %260 : vector<9x9xf32>
    %cst_96 = arith.constant dense<0.000000e+00> : vector<9xf32>
    %262 = vector.multi_reduction <add>, %261, %cst_96 [1] : vector<9x9xf32> to vector<9xf32>
    %263 = vector.shape_cast %262 : vector<9xf32> to vector<9x1xf32>
    %264 = vector.broadcast %263 : vector<9x1xf32> to vector<9x9xf32>
    %265 = arith.divf %261, %264 : vector<9x9xf32>
    %cst_97 = arith.constant dense<0.000000e+00> : vector<9x8xf32>
    %266 = tpu.matmul %265, %252, %cst_97 {dimension_numbers = #tpu.dot_dimension_numbers<[1], [0], [0], [1], [0, 0, 1, 1], [], []>} : vector<9x9xf32>, vector<9x8xf32>, vector<9x8xf32> -> vector<9x8xf32>
    %267 = vector.extract_strided_slice %202 {offsets = [16, 0], sizes = [8, 32], strides = [1, 1]} : vector<32x32xf32> to vector<8x32xf32>
    %cst_98 = arith.constant dense<0.000000e+00> : vector<9x32xf32>
    %268 = tpu.matmul %266, %267, %cst_98 {dimension_numbers = #tpu.dot_dimension_numbers<[1], [0], [0], [1], [0, 0, 1, 1], [], []>} : vector<9x8xf32>, vector<8x32xf32>, vector<9x32xf32> -> vector<9x32xf32>
    %269 = arith.addf %249, %268 : vector<9x32xf32>
    %270 = vector.extract_strided_slice %208 {offsets = [0, 24], sizes = [9, 8], strides = [1, 1]} : vector<9x96xf32> to vector<9x8xf32>
    %271 = vector.extract_strided_slice %208 {offsets = [0, 56], sizes = [9, 8], strides = [1, 1]} : vector<9x96xf32> to vector<9x8xf32>
    %272 = vector.extract_strided_slice %208 {offsets = [0, 88], sizes = [9, 8], strides = [1, 1]} : vector<9x96xf32> to vector<9x8xf32>
    %273 = tpu.transpose %271, [1, 0] : vector<9x8xf32> -> vector<8x9xf32>
    %cst_99 = arith.constant dense<0.000000e+00> : vector<9x9xf32>
    %274 = tpu.matmul %270, %273, %cst_99 {dimension_numbers = #tpu.dot_dimension_numbers<[1], [0], [0], [1], [0, 0, 1, 1], [], []>} : vector<9x8xf32>, vector<8x9xf32>, vector<9x9xf32> -> vector<9x9xf32>
    %275 = vector.broadcast %40 : vector<1x9xf32> to vector<9x9xf32>
    %276 = arith.addf %274, %275 : vector<9x9xf32>
    %cst_100 = arith.constant dense<0xFF800000> : vector<9xf32>
    %277 = vector.multi_reduction <maximumf>, %276, %cst_100 [1] : vector<9x9xf32> to vector<9xf32>
    %278 = vector.shape_cast %277 : vector<9xf32> to vector<9x1xf32>
    %279 = vector.broadcast %278 : vector<9x1xf32> to vector<9x9xf32>
    %280 = arith.subf %276, %279 : vector<9x9xf32>
    %281 = math.exp %280 : vector<9x9xf32>
    %cst_101 = arith.constant dense<0.000000e+00> : vector<9xf32>
    %282 = vector.multi_reduction <add>, %281, %cst_101 [1] : vector<9x9xf32> to vector<9xf32>
    %283 = vector.shape_cast %282 : vector<9xf32> to vector<9x1xf32>
    %284 = vector.broadcast %283 : vector<9x1xf32> to vector<9x9xf32>
    %285 = arith.divf %281, %284 : vector<9x9xf32>
    %cst_102 = arith.constant dense<0.000000e+00> : vector<9x8xf32>
    %286 = tpu.matmul %285, %272, %cst_102 {dimension_numbers = #tpu.dot_dimension_numbers<[1], [0], [0], [1], [0, 0, 1, 1], [], []>} : vector<9x9xf32>, vector<9x8xf32>, vector<9x8xf32> -> vector<9x8xf32>
    %287 = vector.extract_strided_slice %202 {offsets = [24, 0], sizes = [8, 32], strides = [1, 1]} : vector<32x32xf32> to vector<8x32xf32>
    %cst_103 = arith.constant dense<0.000000e+00> : vector<9x32xf32>
    %288 = tpu.matmul %286, %287, %cst_103 {dimension_numbers = #tpu.dot_dimension_numbers<[1], [0], [0], [1], [0, 0, 1, 1], [], []>} : vector<9x8xf32>, vector<8x32xf32>, vector<9x32xf32> -> vector<9x32xf32>
    %289 = arith.addf %269, %288 : vector<9x32xf32>
    %290 = vector.extract_strided_slice %200 {offsets = [1, 0], sizes = [1, 32], strides = [1, 1]} : vector<8x96xf32> to vector<1x32xf32>
    %291 = vector.broadcast %290 : vector<1x32xf32> to vector<9x32xf32>
    %292 = arith.addf %289, %291 : vector<9x32xf32>
    %293 = arith.addf %198, %292 : vector<9x32xf32>
    %294 = vector.extract_strided_slice %200 {offsets = [2, 0], sizes = [1, 32], strides = [1, 1]} : vector<8x96xf32> to vector<1x32xf32>
    %295 = vector.extract_strided_slice %200 {offsets = [3, 0], sizes = [1, 32], strides = [1, 1]} : vector<8x96xf32> to vector<1x32xf32>
    %cst_104 = arith.constant dense<0.000000e+00> : vector<9xf32>
    %296 = vector.multi_reduction <add>, %293, %cst_104 [1] : vector<9x32xf32> to vector<9xf32>
    %297 = vector.shape_cast %296 : vector<9xf32> to vector<9x1xf32>
    %cst_105 = arith.constant 3.200000e+01 : f32
    %298 = vector.broadcast %cst_105 : f32 to vector<9x1xf32>
    %299 = arith.divf %297, %298 : vector<9x1xf32>
    %300 = vector.broadcast %299 : vector<9x1xf32> to vector<9x32xf32>
    %301 = arith.subf %293, %300 : vector<9x32xf32>
    %302 = arith.mulf %301, %301 : vector<9x32xf32>
    %cst_106 = arith.constant dense<0.000000e+00> : vector<9xf32>
    %303 = vector.multi_reduction <add>, %302, %cst_106 [1] : vector<9x32xf32> to vector<9xf32>
    %304 = vector.shape_cast %303 : vector<9xf32> to vector<9x1xf32>
    %cst_107 = arith.constant 3.200000e+01 : f32
    %305 = vector.broadcast %cst_107 : f32 to vector<9x1xf32>
    %306 = arith.divf %304, %305 : vector<9x1xf32>
    %307 = vector.broadcast %299 : vector<9x1xf32> to vector<9x32xf32>
    %308 = arith.subf %293, %307 : vector<9x32xf32>
    %cst_108 = arith.constant 9.99999974E-6 : f32
    %309 = vector.broadcast %cst_108 : f32 to vector<9x1xf32>
    %310 = arith.addf %306, %309 : vector<9x1xf32>
    %311 = math.rsqrt %310 : vector<9x1xf32>
    %312 = vector.broadcast %311 : vector<9x1xf32> to vector<9x32xf32>
    %313 = arith.mulf %308, %312 : vector<9x32xf32>
    %314 = vector.broadcast %294 : vector<1x32xf32> to vector<9x32xf32>
    %315 = arith.mulf %313, %314 : vector<9x32xf32>
    %316 = vector.broadcast %295 : vector<1x32xf32> to vector<9x32xf32>
    %317 = arith.addf %315, %316 : vector<9x32xf32>
    %c1_109 = arith.constant 1 : index
    %c0_110 = arith.constant 0 : index
    %c0_111 = arith.constant 0 : index
    %318 = vector.load %arg11[%c1_109, %c0_110, %c0_111] : memref<2x32x16xf32, #tpu.memory_space<vmem>>, vector<1x32x16xf32>
    %319 = vector.shape_cast %318 : vector<1x32x16xf32> to vector<32x16xf32>
    %cst_112 = arith.constant dense<0.000000e+00> : vector<9x16xf32>
    %320 = tpu.matmul %317, %319, %cst_112 {dimension_numbers = #tpu.dot_dimension_numbers<[1], [0], [0], [1], [0, 0, 1, 1], [], []>} : vector<9x32xf32>, vector<32x16xf32>, vector<9x16xf32> -> vector<9x16xf32>
    %321 = vector.extract_strided_slice %200 {offsets = [4, 0], sizes = [1, 16], strides = [1, 1]} : vector<8x96xf32> to vector<1x16xf32>
    %322 = vector.broadcast %321 : vector<1x16xf32> to vector<9x16xf32>
    %323 = arith.addf %320, %322 : vector<9x16xf32>
    %cst_113 = arith.constant 0.000000e+00 : f32
    %324 = vector.broadcast %cst_113 : f32 to vector<9x16xf32>
    %325 = arith.maximumf %323, %324 : vector<9x16xf32>
    %c1_114 = arith.constant 1 : index
    %c0_115 = arith.constant 0 : index
    %c0_116 = arith.constant 0 : index
    %326 = vector.load %arg12[%c1_114, %c0_115, %c0_116] : memref<2x16x32xf32, #tpu.memory_space<vmem>>, vector<1x16x32xf32>
    %327 = vector.shape_cast %326 : vector<1x16x32xf32> to vector<16x32xf32>
    %cst_117 = arith.constant dense<0.000000e+00> : vector<9x32xf32>
    %328 = tpu.matmul %325, %327, %cst_117 {dimension_numbers = #tpu.dot_dimension_numbers<[1], [0], [0], [1], [0, 0, 1, 1], [], []>} : vector<9x16xf32>, vector<16x32xf32>, vector<9x32xf32> -> vector<9x32xf32>
    %329 = vector.extract_strided_slice %200 {offsets = [5, 0], sizes = [1, 32], strides = [1, 1]} : vector<8x96xf32> to vector<1x32xf32>
    %330 = vector.broadcast %329 : vector<1x32xf32> to vector<9x32xf32>
    %331 = arith.addf %328, %330 : vector<9x32xf32>
    %332 = arith.addf %317, %331 : vector<9x32xf32>
    %333 = vector.extract_strided_slice %200 {offsets = [6, 0], sizes = [1, 32], strides = [1, 1]} : vector<8x96xf32> to vector<1x32xf32>
    %334 = vector.extract_strided_slice %200 {offsets = [7, 0], sizes = [1, 32], strides = [1, 1]} : vector<8x96xf32> to vector<1x32xf32>
    %cst_118 = arith.constant dense<0.000000e+00> : vector<9xf32>
    %335 = vector.multi_reduction <add>, %332, %cst_118 [1] : vector<9x32xf32> to vector<9xf32>
    %336 = vector.shape_cast %335 : vector<9xf32> to vector<9x1xf32>
    %cst_119 = arith.constant 3.200000e+01 : f32
    %337 = vector.broadcast %cst_119 : f32 to vector<9x1xf32>
    %338 = arith.divf %336, %337 : vector<9x1xf32>
    %339 = vector.broadcast %338 : vector<9x1xf32> to vector<9x32xf32>
    %340 = arith.subf %332, %339 : vector<9x32xf32>
    %341 = arith.mulf %340, %340 : vector<9x32xf32>
    %cst_120 = arith.constant dense<0.000000e+00> : vector<9xf32>
    %342 = vector.multi_reduction <add>, %341, %cst_120 [1] : vector<9x32xf32> to vector<9xf32>
    %343 = vector.shape_cast %342 : vector<9xf32> to vector<9x1xf32>
    %cst_121 = arith.constant 3.200000e+01 : f32
    %344 = vector.broadcast %cst_121 : f32 to vector<9x1xf32>
    %345 = arith.divf %343, %344 : vector<9x1xf32>
    %346 = vector.broadcast %338 : vector<9x1xf32> to vector<9x32xf32>
    %347 = arith.subf %332, %346 : vector<9x32xf32>
    %cst_122 = arith.constant 9.99999974E-6 : f32
    %348 = vector.broadcast %cst_122 : f32 to vector<9x1xf32>
    %349 = arith.addf %345, %348 : vector<9x1xf32>
    %350 = math.rsqrt %349 : vector<9x1xf32>
    %351 = vector.broadcast %350 : vector<9x1xf32> to vector<9x32xf32>
    %352 = arith.mulf %347, %351 : vector<9x32xf32>
    %353 = vector.broadcast %333 : vector<1x32xf32> to vector<9x32xf32>
    %354 = arith.mulf %352, %353 : vector<9x32xf32>
    %355 = vector.broadcast %334 : vector<1x32xf32> to vector<9x32xf32>
    %356 = arith.addf %354, %355 : vector<9x32xf32>
    %357 = vector.shape_cast %356 : vector<9x32xf32> to vector<1x9x32xf32>
    %358 = vector.extract_strided_slice %357 {offsets = [0, 0, 0], sizes = [1, 1, 32], strides = [1, 1, 1]} : vector<1x9x32xf32> to vector<1x1x32xf32>
    %359 = vector.shape_cast %358 : vector<1x1x32xf32> to vector<1x32xf32>
    %c0_123 = arith.constant 0 : index
    %c0_124 = arith.constant 0 : index
    %360 = vector.load %arg7[%c0_123, %c0_124] : memref<32x32xf32, #tpu.memory_space<vmem>>, vector<32x32xf32>
    %cst_125 = arith.constant dense<0.000000e+00> : vector<1x32xf32>
    %361 = tpu.matmul %359, %360, %cst_125 {dimension_numbers = #tpu.dot_dimension_numbers<[1], [0], [0], [1], [0, 0, 1, 1], [], []>} : vector<1x32xf32>, vector<32x32xf32>, vector<1x32xf32> -> vector<1x32xf32>
    %c3 = arith.constant 3 : index
    %c0_126 = arith.constant 0 : index
    %362 = vector.load %arg8[%c3, %c0_126] : memref<4x32xf32, #tpu.memory_space<vmem>>, vector<1x32xf32>
    %363 = arith.addf %361, %362 : vector<1x32xf32>
    %364 = vector.shape_cast %363 : vector<1x32xf32> to vector<1x1x32xf32>
    %c0_127 = arith.constant 0 : index
    %c0_128 = arith.constant 0 : index
    %c0_129 = arith.constant 0 : index
    %365 = vector.load %arg14[%c0_127, %c0_128, %c0_129] : memref<1x1x32xf32, #tpu.memory_space<vmem>>, vector<1x1x32xf32>
    tpu.vector_store %arg14[%c0_127, %c0_128, %c0_129], %364 {strides = array<i32>} : memref<1x1x32xf32, #tpu.memory_space<vmem>>, vector<1x1x32xf32>,
    return
  }
  func.func @transform_0(%arg0: i32) -> (i32, i32, i32) {
    %c0_i32 = arith.constant 0 : i32
    %c0_i32_0 = arith.constant 0 : i32
    %c0_i32_1 = arith.constant 0 : i32
    return %arg0, %c0_i32, %c0_i32_0 : i32, i32, i32
  }
  func.func @transform_1(%arg0: i32) -> (i32, i32, i32) {
    %c0_i32 = arith.constant 0 : i32
    %c0_i32_0 = arith.constant 0 : i32
    %c0_i32_1 = arith.constant 0 : i32
    return %arg0, %c0_i32, %c0_i32_0 : i32, i32, i32
  }
  func.func @transform_2(%arg0: i32) -> (i32, i32, i32) {
    %c0_i32 = arith.constant 0 : i32
    %c0_i32_0 = arith.constant 0 : i32
    %c0_i32_1 = arith.constant 0 : i32
    return %arg0, %c0_i32, %c0_i32_0 : i32, i32, i32
  }
  func.func @transform_3(%arg0: i32) -> (i32, i32) {
    %c0_i32 = arith.constant 0 : i32
    %c0_i32_0 = arith.constant 0 : i32
    %c0_i32_1 = arith.constant 0 : i32
    return %c0_i32, %c0_i32_0 : i32, i32
  }
  func.func @transform_4(%arg0: i32) -> (i32, i32) {
    %c0_i32 = arith.constant 0 : i32
    %c0_i32_0 = arith.constant 0 : i32
    %c0_i32_1 = arith.constant 0 : i32
    return %c0_i32, %c0_i32_0 : i32, i32
  }
  func.func @transform_5(%arg0: i32) -> (i32, i32) {
    %c0_i32 = arith.constant 0 : i32
    %c0_i32_0 = arith.constant 0 : i32
    %c0_i32_1 = arith.constant 0 : i32
    return %c0_i32, %c0_i32_0 : i32, i32
  }
  func.func @transform_6(%arg0: i32) -> (i32, i32) {
    %c0_i32 = arith.constant 0 : i32
    %c0_i32_0 = arith.constant 0 : i32
    %c0_i32_1 = arith.constant 0 : i32
    return %c0_i32, %c0_i32_0 : i32, i32
  }
  func.func @transform_7(%arg0: i32) -> (i32, i32) {
    %c0_i32 = arith.constant 0 : i32
    %c0_i32_0 = arith.constant 0 : i32
    %c0_i32_1 = arith.constant 0 : i32
    return %c0_i32, %c0_i32_0 : i32, i32
  }
  func.func @transform_8(%arg0: i32) -> (i32, i32, i32) {
    %c0_i32 = arith.constant 0 : i32
    %c0_i32_0 = arith.constant 0 : i32
    %c0_i32_1 = arith.constant 0 : i32
    %c0_i32_2 = arith.constant 0 : i32
    return %c0_i32, %c0_i32_0, %c0_i32_1 : i32, i32, i32
  }
  func.func @transform_9(%arg0: i32) -> (i32, i32, i32) {
    %c0_i32 = arith.constant 0 : i32
    %c0_i32_0 = arith.constant 0 : i32
    %c0_i32_1 = arith.constant 0 : i32
    %c0_i32_2 = arith.constant 0 : i32
    return %c0_i32, %c0_i32_0, %c0_i32_1 : i32, i32, i32
  }
  func.func @transform_10(%arg0: i32) -> (i32, i32, i32) {
    %c0_i32 = arith.constant 0 : i32
    %c0_i32_0 = arith.constant 0 : i32
    %c0_i32_1 = arith.constant 0 : i32
    %c0_i32_2 = arith.constant 0 : i32
    return %c0_i32, %c0_i32_0, %c0_i32_1 : i32, i32, i32
  }
  func.func @transform_11(%arg0: i32) -> (i32, i32, i32) {
    %c0_i32 = arith.constant 0 : i32
    %c0_i32_0 = arith.constant 0 : i32
    %c0_i32_1 = arith.constant 0 : i32
    %c0_i32_2 = arith.constant 0 : i32
    return %c0_i32, %c0_i32_0, %c0_i32_1 : i32, i32, i32
  }
  func.func @transform_12(%arg0: i32) -> (i32, i32, i32) {
    %c0_i32 = arith.constant 0 : i32
    %c0_i32_0 = arith.constant 0 : i32
    %c0_i32_1 = arith.constant 0 : i32
    %c0_i32_2 = arith.constant 0 : i32
    return %c0_i32, %c0_i32_0, %c0_i32_1 : i32, i32, i32
  }
  func.func @transform_13(%arg0: i32) -> (i32, i32, i32) {
    %c0_i32 = arith.constant 0 : i32
    %c0_i32_0 = arith.constant 0 : i32
    %c0_i32_1 = arith.constant 0 : i32
    return %arg0, %c0_i32, %c0_i32_0 : i32, i32, i32
  }
}

</mosaic_0001>

<bundles_post_ra>
// kernel: tpu_custom_call.1
= control target key start
LH: loop header
LB: loop body
LE: loop exit
PB: predicated region body
PF: predicated region fallthrough
CT: control target
= control target key end

     0   :  { %s5718_s0 = inlined_call_operand.vmem [shape: f32[2,9,4], index: 0, kind: input, shape index: {}]   ;;  %s5719_s1 = inlined_call_operand.vmem [shape: s32[2,9,1], index: 1, kind: input, shape index: {}]   ;;  %s5720_s2 = inlined_call_operand.hbm [shape: f32[2,1,9], index: 2, kind: input, shape index: {}]   ;;  %s5721_s3 = inlined_call_operand.hbm [shape: f32[4,32], index: 3, kind: input, shape index: {}]   ;;  %s5722_s4 = inlined_call_operand.vmem [shape: f32[16,32], index: 4, kind: input, shape index: {}]   ;;  %s5723_s5 = inlined_call_operand.vmem [shape: f32[64,32], index: 5, kind: input, shape index: {}]   ;;  %s5724_s6 = inlined_call_operand.vmem [shape: f32[32,32], index: 6, kind: input, shape index: {}]   ;;  %s5725_s7 = inlined_call_operand.vmem [shape: f32[4,32], index: 7, kind: input, shape index: {}]   ;;  %s5726_s8 = inlined_call_operand.vmem [shape: f32[2,32,96], index: 8, kind: input, shape index: {}]   ;;  %s5727_s9 = inlined_call_operand.vmem [shape: f32[2,32,32], index: 9, kind: input, shape index: {}]   ;;  %s5728_s10 = inlined_call_operand.vmem [shape: f32[2,32,16], index: 10, kind: input, shape index: {}]   ;;  %s5729_s11 = inlined_call_operand.vmem [shape: f32[2,16,32], index: 11, kind: input, shape index: {}]   ;;  %s5730_s12 = inlined_call_operand.hbm [shape: f32[2,8,96], index: 12, kind: input, shape index: {}]   ;;  %s5731_s13 = inlined_call_operand.hbm [shape: f32[2,1,32], index: 13, kind: output, shape index: {}]  }
   0x1   :  { %5751 = sst [smem:[#allocation18_spill]] %s5721_s3 }
   0x2   :  { %5752 = sst [smem:[#allocation19_spill]] %s5730_s12 }
   0x3   :  { %18 = vsyncpa [#allocation3], 0 }
   0x4   :  { %20 = vsyncpa [#allocation3 + $0x1], 0 }
   0x5   :  { %21 = vsyncpa [#allocation6], 0 }
   0x6   :  { %22 = vsyncpa [#allocation4], 0 }
   0x7   :  { %24 = vsyncpa [#allocation4 + $0x1], 0  ;;  %s5022_s25 = smov 0   ;;  %s5024_s26 = smov 0  }
   0x8   :  { %s5026_s27 = smov 0   ;;  %s5028_s28 = smov 0  }
   0x9 LB: > { %5753 = sst [smem:[#allocation12_spill]] %s4918_s25  ;;  %s5043_s29 = sadd.s32 4294967295, %s4930_s28   ;;  %s4930_s28 = sphi %s5028_s28, %s5783_s28   ;;  %s4926_s27 = sphi %s5026_s27, %s5785_s27   ;;  %s4922_s26 = sphi %s5024_s26, %s5787_s26   ;;  %s4918_s25 = sphi %s5022_s25, %s5786_s25  }
   0xa   : > { %5754 = sst [smem:[#allocation13_spill]] %s4926_s27  ;;  %s4088_s30 = sadd.s32 4294967294, %s4930_s28  }
   0xb   : > { %5755 = sst [smem:[#allocation14_spill]] %s4930_s28  ;;  %p102_p0 = scmp.ne.s32.totalorder %s4922_s26, %s4918_s25 }
   0xc   : > { %p5732_p1 = scmp.eq.s32.totalorder %s5043_s29, 0  ;;  %p342_p3 = scmp.eq.s32.totalorder %s4088_s30, 1 }
   0xd   : > { %p4089_p5 = scmp.ge.s32.totalorder %s4930_s28, 1  ;;  %p349_p7 = scmp.lt.s32.totalorder %s4930_s28, 3 }
   0xe   : > { %p5052_p4 = por %p5732_p1, %p102_p0  ;;  %p5057_p6 = por %p342_p3, %p102_p0 }
   0xf   : > { %p5062_p8 = pnand %p4089_p5, %p349_p7  ;;  %s4932_s17 = smov [#allocation5]  }
  0x10   : > { %s5756_s14 = scalar_select %p5052_p4, 1, 0 }
  0x11   : > { %s5757_s15 = scalar_select %p5057_p6, 1, 0 }
  0x12   : > { %s5759_s16 = scalar_select %p5062_p8, 1, 0 }
  0x13   : > { %5758 = sst [smem:[#allocation15_spill]] %s5757_s15  ;;  %s362_s18 = sshll.u32 %s4932_s17, 4  ;;  %s363_s18 = int_to_ptr.vmem [resolvable:$true] %s362_s18 }
  0x14   : > { %p4631_p10 = pneg %p5062_p8  ;;  %s4933_s19 = smov [#allocation7]  }
  0x15   : > { %s396_s20 = sshll.u32 %s4933_s19, 4  ;;  %s4793_s22 = scalar_lea.vmem %s363_s18, 64  ;;  %s397_s20 = int_to_ptr.vmem [resolvable:$true] %s396_s20 }
  0x16   : > { %p5071_p11 = pnand %p4631_p10, %p5732_p1  ;;  %p4794_p13 = scmp.ne.s32.totalorder %s363_s18, %s4793_s22 }
  0x17   : > { %p4801_p5 = scmp.lt.s32.totalorder %s363_s18, %s363_s18  ;;  %p4802_p7 = scmp.lt.s32.totalorder %s4793_s22, %s4793_s22 }
  0x18   : > { %p4784_p12 = pneg %p5071_p11 }
  0x19   : > { %p4803_p9 = por %p4802_p7, %p4801_p5 }
  0x1a   : > { %p4796_p0 = pnand %p4794_p13, %p4784_p12 }
  0x1c   : > { %p4797_p3 = pneg %p4796_p0 }
  0x1e   : > { %p4804_p2 = pnand %p4803_p9, %p4797_p3 }
  0x20   : > { %4807 = shalt.err (!%p4804_p2)
}
  0x21   : > { %s5761_s3 = sld [smem:[#allocation18_spill]]  ;;  %s4819_s30 = scalar_lea.vmem %s397_s20, 256 }
  0x22   : > { %p4820_p10 = scmp.ne.s32.totalorder %s397_s20, %s4819_s30  ;;  %p4827_p13 = scmp.lt.s32.totalorder %s397_s20, %s397_s20 }
  0x23   : > { %p4828_p0 = scmp.lt.s32.totalorder %s4819_s30, %s4819_s30 }
  0x24   : > { %p4822_p1 = pnand %p4820_p10, %p4784_p12 }
  0x25   : > { %p4829_p4 = por %p4828_p0, %p4827_p13 }
  0x26   : > { %p4823_p6 = pneg %p4822_p1 }
  0x27   : > { %4634 = dma.hbm_to_vmem [thread:$0]  (!%p5071_p11), %s5761_s3, 64, %s363_s18, [#allocation6]  }
  0x28   : > { %p4830_p8 = pnand %p4829_p4, %p4823_p6 }
  0x2a   : > { %4833 = shalt.err (!%p4830_p8)
}
  0x2b   : > { %s4934_s17 = smov 128   ;;  %s4935_s18 = smov 8  }
  0x2c   : > { %s5762_s12 = sld [smem:[#allocation19_spill]]  ;;  %s5094_s23 = sadd.s32 1, %s4930_s28  }
  0x2d   : > { %5763 = sst [smem:[#allocation16_spill]] %s5094_s23  ;;  %s89_s24 = sadd.s32 1, %s4926_s27 }
  0x2e   : > { %s86_s30 = ssub.s32 %s4930_s28, %s5094_s23  ;;  %p96_p1 = scmp.ne.s32.totalorder %s4926_s27, %s4922_s26 }
  0x2f   : > { %p87_p2 = scmp.eq.s32.totalorder %s86_s30, 0  ;;  %p97_p4 = scmp.eq.s32.totalorder %s4930_s28, 0 }
  0x30   : > { %p5764_p6 = scmp.eq.s32.totalorder %s5043_s29, 1  ;;  %p4648_p9 = scmp.lt.s32.totalorder %s4930_s28, 2 }
  0x31   : > { %s5110_s15 = scalar_select %p87_p2, %s4926_s27, %s89_s24  }
  0x32   : > { %4637 = dma.hbm_to_vmem [thread:$0]  (!%p5071_p11), %s5762_s12, 256, %s397_s20, [#allocation6], %s4934_s17, %s4934_s17, %s4935_s18  }
  0x33   : > { %p5104_p8 = por %p5764_p6, %p96_p1  ;;  %5766 = sst [smem:[#allocation17_spill]] %s5110_s15 }
  0x34   : > { %p98_p12 = por %p97_p4, %p96_p1  ;;  %s426_s21 = sand.u32 1, %s4926_s27  }
  0x35   : > { %s5765_s3 = scalar_select %p5104_p8, 1, 0 }
  0x36   : > { %s4093_s19 = sshll.u32 %s4930_s28, 4  ;;  %s429_s20 = scalar_lea.vmem [#allocation2], %s426_s21 }
  0x37   : > { %s436_s17 = sshll.u32 %s429_s20, 4  ;;  %s5117_s12 = scalar_lea.hbm %s5720_s2, %s4093_s19  ;;  %s437_s17 = int_to_ptr.vmem [resolvable:$true] %s436_s17 }
  0x38   : > { %p5119_p11 = pnand %p4648_p9, %p98_p12  ;;  %s427_s24 = scalar_lea.sflag [#allocation3], %s426_s21 }
  0x39   : > { %s4834_s15 = scalar_lea.hbm %s5117_s12, 16  ;;  %s4839_s19 = scalar_lea.hbm %s5720_s2, 32 }
  0x3a   : > { %p4835_p3 = scmp.ne.s32.totalorder %s5117_s12, %s4834_s15  ;;  %p4836_p5 = pneg %p5119_p11 }
  0x3b   : > { %p4840_p13 = scmp.lt.s32.totalorder %s5117_s12, %s5720_s2  ;;  %p4841_p0 = scmp.lt.s32.totalorder %s4839_s19, %s4834_s15 }
  0x3c   : > { %p4837_p7 = pnand %p4836_p5, %p4835_p3 }
  0x3d   : > { %p4842_p1 = por %p4841_p0, %p4840_p13 }
  0x3e   : > { %p4838_p10 = pneg %p4837_p7 }
  0x40   : > { %p4843_p2 = pnand %p4842_p1, %p4838_p10 }
  0x42   : > { %4846 = shalt.err (!%p4843_p2)
}
  0x43   : > { %s4847_s23 = scalar_lea.vmem %s437_s17, 16  ;;  %s4936_s21 = smov [#allocation2]  }
  0x44   : > { %p4848_p4 = scmp.ne.s32.totalorder %s437_s17, %s4847_s23  ;;  %s4852_s28 = sshll.u32 %s4936_s21, 4  ;;  %s4853_s28 = int_to_ptr.vmem [resolvable:$false] %s4852_s28 }
  0x45   : > { %s4854_s25 = scalar_lea.vmem %s4853_s28, 32  ;;  %p4855_p12 = scmp.lt.s32.totalorder %s437_s17, %s4853_s28 }
  0x46   : > { %p4850_p6 = pnand %p4848_p4, %p4836_p5  ;;  %p4856_p3 = scmp.lt.s32.totalorder %s4854_s25, %s4847_s23 }
  0x48   : > { %p4851_p9 = pneg %p4850_p6  ;;  %p4857_p7 = por %p4856_p3, %p4855_p12 }
  0x4a   : > { %p4858_p8 = pnand %p4857_p7, %p4851_p9 }
  0x4c   : > { %4861 = shalt.err (!%p4858_p8)
}
  0x4d   : > { %4641 = dma.hbm_to_vmem [thread:$0]  (!%p5119_p11), %s5117_s12, 16, %s437_s17, %s427_s24  }
  0x4e   : > { %p5768_p10 = scmp.ne.s32.totalorder %s5759_s16, 0 }
  0x4f   : > { %s5140_s27 = sand.u32 (!%p5768_p10), 1, %s4922_s26   ;;  %p5769_p5 = scmp.ne.s32.totalorder (!%p5768_p10), %s5756_s14, 0 }
  0x50   : > { %445 = sbr.rel (%p5768_p10) target bundleno = 7273 (0x1c69), region = 72  ;;  %s448_s15 = scalar_lea.sflag (!%p5768_p10), [#allocation3], %s5140_s27 }
  0x51   : > { %s5746_s20 = scalar_lea.vmem (!%p5768_p10), [#allocation2], %s5140_s27 }
  0x55   : > { %4905 = dma.done.wait (%p5769_p5), %s448_s15, 16  }
  0x56   : > { %4907 = vsyncadd (%p5769_p5), %s448_s15, 4294967280  ;;  %p5770_p8 = scmp.eq.s32.totalorder %s5043_s29, 0 }
  0x58   : > { %4909 = dma.done.wait (%p5770_p8), [#allocation6], 320   ;;  %p5771_p11 = pmov %p5770_p8 }
  0x59   : > { %p509_p13 = scmp.lt.s32.totalorder %s5043_s29, 1  ;;  %v4937_v0 = vmov 0   ;;  %vm550_vm0 = vcmask 1043456   ;;  %vm543_vm1 = vcmask 31744   ;;  %v537_v2 = vld [vmem:[#allocation5] sm:$0xf]  ;;  %v523_v11 = vlaneseq }
  0x5a   : > { %4911 = vsyncadd (%p5771_p11), [#allocation6], 4294966976  ;;  %4702 = vset.pattern.permute.xlu0 %v4937_v0  ;;  %4364 = vmatprep.subr.msk.mxu1 %vm550_vm0, %v537_v2  ;;  %v630_v5 = vld [vmem:[%s5722_s4 + $0x8] sm:$0xff]  ;;  %v629_v7 = vld [vmem:[%s5722_s4] sm:$0xff]  ;;  %vm631_vm2 = vcmask 130048   ;;  %v4938_v14 = vmov 0.0  }
  0x5b   : > { %s510_s12 = scalar_select %p509_p13, %s5043_s29, 1  ;;  %4365 = vmatpush3.msk.msra.mxu1 %vm550_vm0, %v537_v2  ;;  %v716_v8 = vld [vmem:[%s5723_s5 + $0x18] sm:$0xff]  ;;  %v719_v10 = vld [vmem:[%s5723_s5 + $0x30] sm:$0xff]  ;;  %v524_v12 = vand.u32 127, %v523_v11  ;;  %v714_v19 = vld [vmem:[%s5723_s5 + $0x8] sm:$0xff]  ;;  %vm721_vm5 = vcmask 261120  }
  0x5c   : > { %4369 = vmatprep.subr.mxu1 %v630_v5  ;;  %v720_v9 = vld [vmem:[%s5723_s5 + $0x38] sm:$0xff]  ;;  %v715_v18 = vld [vmem:[%s5723_s5 + $0x10] sm:$0xff]  ;;  %v713_v20 = vld [vmem:[%s5723_s5] sm:$0xff]  ;;  %v5216_v40 = vshrl.u32 %v523_v11, 7  ;;  %vm1020_vm9 = vcmask 64512   ;;  %s4941_s28 = smov 120  }
  0x5d   : > { %s4218_s25 = sshll.u32 %s510_s12, 4  ;;  %4376 = vmatprep.subr.mxu0 %v720_v9  ;;  %v4103_v21 = vld [vmem:[%s5725_s7 + $0x1] ss:$0 sm:$0xff]  ;;  %v718_v22 = vld [vmem:[%s5723_s5 + $0x28] sm:$0xff]  ;;  %v922_v30 = vld [vmem:[%s5726_s8 + $0x18] sm:$0xff]  ;;  %s4939_s12 = smov 88  }
  0x5e   : > { %s518_s23 = scalar_lea.vmem %s5719_s1, %s4218_s25  ;;  %s513_s30 = scalar_lea.vmem %s5718_s0, %s4218_s25  ;;  %4377 = vmatpush3.msra.mxu0 %v720_v9  ;;  %v717_v24 = vld [vmem:[%s5723_s5 + $0x20] sm:$0xff]  ;;  %v921_v31 = vld [vmem:[%s5726_s8 + $0x10] sm:$0xff]  ;;  %v920_v32 = vld [vmem:[%s5726_s8 + $0x8] sm:$0xff]  ;;  %vm900_vm7 = vcmp.eq.s32.totalorder %v5216_v40, 0  ;;  %v925_v50 = vsub.s32 0, %v5216_v40  ;;  %vm1108_vm10 = vcmask 65536  }
  0x5f   : > { %v521_v1 = vld [vmem:[%s518_s23] sm:$0xff]  ;;  %v520_v4 = vld [vmem:[%s513_s30 + $0x8] sm:$0x1]  ;;  %4378 = vmatprep.subr.mxu0 %v719_v10  ;;  %s4940_s25 = smov 96   ;;  %vm1104_vm11 = vcmask 72704   ;;  %s4942_s16 = smov 64  }
  0x60   : > { %526 = vperm.xlu0 %4702, %v521_v1   ;;  %v519_v3 = vld [vmem:[%s513_s30] sm:$0xff]  ;;  %v522_v6 = vld [vmem:[%s518_s23 + $0x8] sm:$0x1]  ;;  %4379 = vmatpush3.msra.mxu0 %v719_v10  ;;  %vm1139_vm12 = vcmask 1040384   ;;  %s4943_s23 = smov 56   ;;  %s4944_s14 = smov 80  }
  0x61   : > { %4366 = vmatprep.mubr.msk.f32.mxu1 %vm543_vm1, %v519_v3  ;;  %4380 = vmatprep.subr.mxu0 %v718_v22  ;;  %v919_v33 = vld [vmem:[%s5726_s8] sm:$0xff]  ;;  %s4945_s17 = smov 112   ;;  %s5749_s30 = smov 72   ;;  %vm2159_vm13 = vcmask 253952   ;;  %vm4950_vm14 = vmmov 0  }
  0x62   : > { %4367 = vmatmul.mubr.msk.f32.vlgmr.msra.gmra.mxu1 %vm543_vm1, %v520_v4  ;;  %4381 = vmatpush3.msra.mxu0 %v718_v22  ;;  %v4113_v36 = vld [vmem:[%s5725_s7 + $0x2] ss:$0 sm:$0xff]  ;;  %v4114_v44 = vld [vmem:[%s5725_s7] ss:$0 sm:$0xff]  ;;  %v5231_v51 = vld [vmem:[#allocation7] sm:$0xff]  ;;  %s5747_s24 = smov 104  }
  0x63   : > { %4370 = vmatpush3.msra.mxu1 %v630_v5  ;;  %4382 = vmatprep.subr.mxu0 %v717_v24  ;;  %v926_v52 = vrot.slane %v5231_v51, %v925_v50  ;;  %v5268_v63 = vld [vmem:[%s5746_s20] ss:$0 sm:$0xff]  ;;  %s5744_s15 = smov 48   ;;  %s5742_s18 = smov 40  }
  0x64   : > { %529 = vperm.xlu0 %4702, %v522_v6   ;;  %4371 = vmatprep.subr.mxu1 %v629_v7  ;;  %s5776_s22 = smov 40   ;;  %s3970_s20 = scalar_lea.sflag [#allocation4], %s5140_s27 }
  0x65   : > { %4372 = vmatpush3.msra.mxu1 %v629_v7  ;;  %4383 = vmatpush3.msra.mxu0 %v717_v24  ;;  %p5777_p1 = scmp.ne.s32.totalorder %s5765_s3, 0 }
  0x66   : > { %4387 = vmatprep.subr.mxu1 %v716_v8  ;;  %4398 = vmatprep.subr.mxu0 %v922_v30 }
  0xdb   : > { %v527_v13 = vpop.permute.xlu0 %526 }
  0xdc   : > { %vm531_vm3 = vcmp.eq.s32.totalorder %v527_v13, %v524_v12 }
  0xdd   : > { %v4101_v15 = vsel %vm531_vm3, 1.0, %v4938_v14 }
  0xde   : > { %4373 = vmatprep.mubr.msk.f32.mxu1 %vm631_vm2, %v4101_v15 }
  0xdf   : > { %v530_v16 = vpop.permute.xlu0 %529 }
  0xe0   : > { %vm532_vm4 = vcmp.eq.s32.totalorder %v530_v16, %v524_v12 }
  0xe1   : > { %v4102_v17 = vsel %vm532_vm4, 1.0, %v4938_v14 }
  0xe2   : > { %4374 = vmatmul.mubr.msk.f32.vlgmr.msra.gmra.mxu1 %vm631_vm2, %v4102_v17 }
  0xe3   : > { %4388 = vmatpush3.msra.mxu1 %v716_v8 }
  0xe4   : > { %4389 = vmatprep.subr.mxu1 %v715_v18 }
  0xe5   : > { %4390 = vmatpush3.msra.mxu1 %v715_v18 }
  0xe6   : > { %4391 = vmatprep.subr.mxu1 %v714_v19 }
  0xe7   : > { %4392 = vmatpush3.msra.mxu1 %v714_v19 }
  0xe8   : > { %4393 = vmatprep.subr.mxu1 %v713_v20 }
  0xe9   : > { %4394 = vmatpush3.msra.mxu1 %v713_v20 }
 0x122   : > { %v4368_v23 = vpop.f32.mrf.mxu1 }
 0x123   : > { %v626_v25 = vadd.f32 %v4368_v23, %v4103_v21 }
 0x124   : > { %v620_v26 = vpop.f32.mrf.mxu1 }
 0x125   : > { %v621_v27 = vadd.f32 %v4103_v21, %v620_v26 }
 0x127   : > { %4395 = vmatprep.mubr.msk.f32.mxu1 %vm721_vm5, %v621_v27 }
 0x128   : > { %4396 = vmatmul.mubr.msk.f32.vlgmr.msra.gmra.mxu1 %vm721_vm5, %v626_v25 }
 0x1a2   : > { %v4375_v28 = vpop.f32.mrf.mxu1 }
 0x1a4   : > { %v704_v29 = vpop.f32.mrf.mxu1 }
 0x1a5   : > { %4384 = vmatprep.mubr.msk.f32.mxu0 %vm721_vm5, %v704_v29 }
 0x1a6   : > { %4385 = vmatmul.mubr.msk.f32.vlgmr.msra.gmra.mxu0 %vm721_vm5, %v4375_v28 }
 0x1a7   : > { %4399 = vmatpush3.msra.mxu0 %v922_v30 }
 0x1a8   : > { %4400 = vmatprep.subr.mxu0 %v921_v31 }
 0x1a9   : > { %4401 = vmatpush3.msra.mxu0 %v921_v31 }
 0x1aa   : > { %4402 = vmatprep.subr.mxu0 %v920_v32 }
 0x1ab   : > { %4403 = vmatpush3.msra.mxu0 %v920_v32 }
 0x1ac   : > { %4404 = vmatprep.subr.mxu0 %v919_v33 }
 0x1ad   : > { %4405 = vmatpush3.msra.mxu0 %v919_v33 }
 0x1e8   : > { %v4397_v34 = vpop.f32.mrf.mxu1 }
 0x1ea   : > { %v875_v38 = vpop.f32.mrf.mxu1 }
 0x266   : > { %v4386_v35 = vpop.f32.mrf.mxu0 }
 0x267   : > { %v881_v37 = vadd.f32 %v4397_v34, %v4386_v35 }
 0x268   : > { %v794_v39 = vpop.f32.mrf.mxu0 }
 0x269   : > { %v890_v41 = vadd.f32 %v4113_v36, %v881_v37  ;;  %v876_v42 = vadd.f32 %v875_v38, %v794_v39 }
 0x26b   : > { %v889_v43 = vadd.f32 %v4113_v36, %v876_v42  ;;  %v894_v45 = vmul.f32 0.01, %v890_v41  ;;  %vm892_vm8 = vcmp.gt.f32.partialorder %v890_v41, 0.0 }
 0x26d   : > { %vm891_vm6 = vcmp.gt.f32.partialorder %v889_v43, 0.0  ;;  %v893_v46 = vmul.f32 0.01, %v889_v43  ;;  %v5226_v49 = vsel %vm892_vm8, %v890_v41, %v894_v45 }
 0x26f   : > { %v895_v47 = vsel %vm891_vm6, %v889_v43, %v893_v46  ;;  %v916_v46 = vld [vmem:[%s5727_s9 + $0x8] sm:$0xff] }
 0x270   : > { %v5222_v48 = vsel %vm900_vm7, %v4114_v44, %v895_v47 }
 0x271   : > { %4406 = vmatprep.mubr.msk.f32.mxu0 %vm721_vm5, %v5222_v48 }
 0x272   : > { %4407 = vmatmul.mubr.msk.f32.vlgmr.msra.gmra.mxu0 %vm721_vm5, %v5226_v49 }
 0x332   : > { %v4408_v53 = vpop.f32.mrf.mxu0 }
 0x333   : > { %v5236_v54 = vadd.f32 %v4408_v53, %v926_v52 }
 0x334   : > { %v999_v55 = vpop.f32.mrf.mxu0 }
 0x335   : > { %v5238_v56 = vadd.f32 %v999_v55, %v926_v52  ;;  %1223 = vrot.lane.b32.xlu0 %v5236_v54, %s4939_s12  ;;  %1018 = vrot.lane.b32.xlu1 %v5236_v54, %s4940_s25 }
 0x337   : > { %4413 = vmatprep.mubr.msk.f32.mxu1 %vm1020_vm9, %v5238_v56 }
 0x339   : > { %1217 = vrot.lane.b32.xlu0 %v5238_v56, %s4941_s28  ;;  %1016 = vrot.lane.b32.xlu1 %v5238_v56, %s4940_s25 }
 0x33d   : > { %1221 = vrot.lane.b32.xlu1 %v5238_v56, %s4939_s12 }
 0x341   : > { %1219 = vrot.lane.b32.xlu1 %v5236_v54, %s4941_s28 }
 0x3a7   : > { %v1019_v57 = vpop.permute.xlu1 %1018  ;;  %v1224_v58 = vpop.permute.xlu0 %1223 }
 0x3a8   : > { %4409 = vmatprep.subr.msk.mxu1 %vm1020_vm9, %v1019_v57 }
 0x3a9   : > { %4410 = vmatpush3.xpose.msk.msra.mxu1 %vm1020_vm9, %v1019_v57 }
 0x3ab   : > { %v1017_v59 = vpop.permute.xlu1 %1016  ;;  %v1218_v60 = vpop.permute.xlu0 %1217 }
 0x3ac   : > { %4411 = vmatprep.subr.msk.mxu1 %vm1020_vm9, %v1017_v59 }
 0x3ad   : > { %4412 = vmatpush3.xpose.msk.msra.mxu1 %vm1020_vm9, %v1017_v59 }
 0x3ae   : > { %4423 = vmatprep.subr.msk.mxu1 %vm1020_vm9, %v1224_v58 }
 0x3af   : > { %v1222_v61 = vpop.permute.xlu1 %1221 }
 0x3b0   : > { %4414 = vmatmul.mubr.msk.f32.vlgmr.msra.gmra.mxu1 %vm1020_vm9, %v5236_v54 }
 0x3b1   : > { %4424 = vmatpush3.xpose.msk.msra.mxu1 %vm1020_vm9, %v1224_v58  ;;  %4427 = vmatprep.mubr.msk.f32.mxu1 %vm1020_vm9, %v1218_v60  ;;  %v915_v58 = vld [vmem:[%s5727_s9] sm:$0xff] }
 0x3b2   : > { %4425 = vmatprep.subr.msk.mxu1 %vm1020_vm9, %v1222_v61 }
 0x3b3   : > { %v1220_v62 = vpop.permute.xlu1 %1219 }
 0x3b5   : > { %4426 = vmatpush3.xpose.msk.msra.mxu1 %vm1020_vm9, %v1222_v61 }
 0x3b6   : > { %4442 = vmatprep.subr.mxu1 %v915_v58 }
 0x3b8   : > { %4428 = vmatmul.mubr.msk.f32.vlgmr.msra.gmra.mxu1 %vm1020_vm9, %v1220_v62 }
 0x3b9   : > { %4443 = vmatpush3.msra.mxu1 %v915_v58 }
 0x470   : > { %v4415_v0 = vpop.f32.mrf.mxu1 }
 0x471   : > { %v1101_v1 = vadd.f32 %v4415_v0, %v5268_v63 }
 0x472   : > { %v1095_v2 = vpop.f32.mrf.mxu1 }
 0x473   : > { %v1096_v3 = vadd.f32 %v5268_v63, %v1095_v2  ;;  %v1109_v4 = vsel %vm1108_vm10, %v1101_v1, -inf }
 0x474   : > { %1110 = vmax.xlane.f32.xlu1 %v1109_v4 }
 0x475   : > { %v1105_v5 = vsel %vm1104_vm11, %v1096_v3, -inf }
 0x476   : > { %1106 = vmax.xlane.f32.xlu0 %v1105_v5 }
 0x478   : > { %v4429_v6 = vpop.f32.mrf.mxu1 }
 0x479   : > { %v1305_v9 = vadd.f32 %v4429_v6, %v5268_v63 }
 0x47a   : > { %v1299_v7 = vpop.f32.mrf.mxu1 }
 0x47b   : > { %v1300_v8 = vadd.f32 %v5268_v63, %v1299_v7  ;;  %v1311_v11 = vsel %vm1108_vm10, %v1305_v9, -inf }
 0x47d   : > { %v1308_v10 = vsel %vm1104_vm11, %v1300_v8, -inf }
 0x47e   : > { %1309 = vmax.xlane.f32.xlu0 %v1308_v10 }
 0x482   : > { %1312 = vmax.xlane.f32.xlu0 %v1311_v11 }
 0x485   : > { %1130 = vrot.lane.b32.xlu1 %v5236_v54, %s4942_s16 }
 0x4fd   : > { %v1111_v12 = vpop.xlane.xlu1 %1110 }
 0x4fe   : > { %v1113_v13 = vsub.f32 %v1101_v1, %v1111_v12 }
 0x4ff   : > { %v1107_v15 = vpop.xlane.xlu0 %1106 }
 0x500   : > { %v1116_v16 = vmul.f32 1.442695, %v1113_v13  ;;  %v1112_v17 = vsub.f32 %v1096_v3, %v1107_v15 }
 0x501   : > { %v1131_v18 = vpop.permute.xlu1 %1130 }
 0x502   : > { %4703 = vpow2.f32 %v1116_v16  ;;  %v1114_v19 = vmul.f32 1.442695, %v1112_v17  ;;  %4416 = vmatprep.subr.msk.mxu0 %vm1139_vm12, %v1131_v18 }
 0x503   : > { %4417 = vmatpush3.msk.msra.mxu0 %vm1139_vm12, %v1131_v18 }
 0x504   : > { %4705 = vpow2.f32 %v1114_v19 }
 0x507   : > { %v1310_v20 = vpop.xlane.xlu0 %1309 }
 0x508   : > { %v1314_v30 = vsub.f32 %v1300_v8, %v1310_v20 }
 0x50a   : > { %v1316_v31 = vmul.f32 1.442695, %v1314_v30 }
 0x50b   : > { %v1313_v21 = vpop.xlane.xlu0 %1312 }
 0x50c   : > { %v1315_v22 = vsub.f32 %v1305_v9, %v1313_v21 }
 0x50e   : > { %v1318_v23 = vmul.f32 1.442695, %v1315_v22 }
 0x50f   : > { %v4704_v24 = vpop.eup %4703 }
 0x510   : > { %4707 = vpow2.f32 %v1318_v23  ;;  %v1121_v25 = vsel %vm1108_vm10, %v4704_v24, 0.0 }
 0x511   : > { %v4706_v26 = vpop.eup %4705  ;;  %1122 = vadd.xlane.f32.xlu0 %v1121_v25  ;;  %4709 = vpow2.f32 %v1316_v31 }
 0x512   : > { %v1118_v27 = vsel %vm1104_vm11, %v4706_v26, 0.0 }
 0x513   : > { %1119 = vadd.xlane.f32.xlu1 %v1118_v27 }
 0x51d   : > { %v4708_v28 = vpop.eup %4707 }
 0x51e   : > { %v1323_v29 = vsel %vm1108_vm10, %v4708_v28, 0.0  ;;  %v4710_v32 = vpop.eup %4709 }
 0x51f   : > { %1324 = vadd.xlane.f32.xlu0 %v1323_v29  ;;  %v1320_v33 = vsel %vm1104_vm11, %v4710_v32, 0.0 }
 0x524   : > { %1332 = vrot.lane.b32.xlu1 %v5236_v54, %s4943_s23 }
 0x535   : > { %1128 = vrot.lane.b32.xlu0 %v5238_v56, %s4942_s16 }
 0x539   : > { %1586 = vrot.lane.b32.xlu0 %v5236_v54, %s4944_s14 }
 0x53d   : > { %1580 = vrot.lane.b32.xlu0 %v5238_v56, %s4945_s17 }
 0x541   : > { %1870 = vrot.lane.b32.xlu0 %v5236_v54, %s5749_s30 }
 0x545   : > { %1864 = vrot.lane.b32.xlu0 %v5238_v56, %s5747_s24 }
 0x548   : > { %1321 = vadd.xlane.f32.xlu1 %v1320_v33 }
 0x559   : > { %1330 = vrot.lane.b32.xlu1 %v5238_v56, %s4943_s23 }
 0x55d   : > { %1584 = vrot.lane.b32.xlu1 %v5238_v56, %s4944_s14 }
 0x561   : > { %1582 = vrot.lane.b32.xlu1 %v5236_v54, %s4945_s17 }
 0x565   : > { %1868 = vrot.lane.b32.xlu1 %v5238_v56, %s5749_s30 }
 0x569   : > { %1866 = vrot.lane.b32.xlu1 %v5236_v54, %s5747_s24 }
 0x59a   : > { %v1123_v34 = vpop.xlane.xlu0 %1122 }
 0x59b   : > { %4711 = vrcp.f32 %v1123_v34 }
 0x59c   : > { %v1120_v35 = vpop.xlane.xlu1 %1119 }
 0x59d   : > { %4713 = vrcp.f32 %v1120_v35 }
 0x5a0   : > { %v1333_v43 = vpop.permute.xlu1 %1332 }
 0x5a8   : > { %v1325_v36 = vpop.xlane.xlu0 %1324  ;;  %v4712_v37 = vpop.eup %4711 }
 0x5a9   : > { %v1127_v42 = vmul.f32 %v4712_v37, %v4704_v24  ;;  %4715 = vrcp.f32 %v1325_v36 }
 0x5aa   : > { %v4714_v38 = vpop.eup %4713 }
 0x5ab   : > { %v1125_v39 = vmul.f32 %v4714_v38, %v4706_v26 }
 0x5ac   : > { %v1129_v41 = vpop.permute.xlu0 %1128 }
 0x5ad   : > { %4418 = vmatprep.subr.mxu0 %v1129_v41  ;;  %4420 = vmatprep.mubr.msk.f32.mxu0 %vm1104_vm11, %v1125_v39 }
 0x5ae   : > { %4419 = vmatpush3.msra.mxu0 %v1129_v41 }
 0x5af   : > { %4421 = vmatmul.mubr.msk.f32.vlgmr.msra.gmra.mxu0 %vm1104_vm11, %v1127_v42  ;;  %4430 = vmatprep.subr.msk.mxu0 %vm1139_vm12, %v1333_v43 }
 0x5b0   : > { %4431 = vmatpush3.msk.msra.mxu0 %vm1139_vm12, %v1333_v43  ;;  %v1587_v57 = vpop.permute.xlu0 %1586 }
 0x5b4   : > { %v1581_v61 = vpop.permute.xlu0 %1580 }
 0x5b6   : > { %v4716_v47 = vpop.eup %4715 }
 0x5b7   : > { %v1329_v55 = vmul.f32 %v4716_v47, %v4708_v28 }
 0x5b8   : > { %v1871_v2 = vpop.permute.xlu0 %1870 }
 0x5bc   : > { %v1865_v4 = vpop.permute.xlu0 %1864 }
 0x5d1   : > { %v1322_v44 = vpop.xlane.xlu1 %1321 }
 0x5d2   : > { %4717 = vrcp.f32 %v1322_v44  ;;  %v917_v44 = vld [vmem:[%s5727_s9 + $0x10] sm:$0xff] }
 0x5d5   : > { %v1331_v45 = vpop.permute.xlu1 %1330 }
 0x5d6   : > { %4432 = vmatprep.subr.mxu0 %v1331_v45 }
 0x5d7   : > { %4433 = vmatpush3.msra.mxu0 %v1331_v45 }
 0x5d8   : > { %4437 = vmatprep.subr.mxu0 %v916_v46 }
 0x5d9   : > { %v1585_v0 = vpop.permute.xlu1 %1584 }
 0x5dd   : > { %v1583_v3 = vpop.permute.xlu1 %1582 }
 0x5df   : > { %v4718_v52 = vpop.eup %4717 }
 0x5e0   : > { %v1327_v53 = vmul.f32 %v4718_v52, %v4710_v32 }
 0x5e1   : > { %v1869_v5 = vpop.permute.xlu1 %1868 }
 0x5e2   : > { %4434 = vmatprep.mubr.msk.f32.mxu0 %vm1104_vm11, %v1327_v53 }
 0x5e3   : > { %4435 = vmatmul.mubr.msk.f32.vlgmr.msra.gmra.mxu0 %vm1104_vm11, %v1329_v55 }
 0x5e4   : > { %4438 = vmatpush3.msra.mxu0 %v916_v46 }
 0x5e5   : > { %4447 = vmatprep.subr.msk.mxu0 %vm1020_vm9, %v1587_v57  ;;  %v1867_v6 = vpop.permute.xlu1 %1866 }
 0x66f   : > { %v4422_v59 = vpop.f32.mrf.mxu0 }
 0x671   : > { %v1208_v60 = vpop.f32.mrf.mxu0 }
 0x672   : > { %4444 = vmatprep.mubr.msk.f32.mxu1 %vm1020_vm9, %v1208_v60 }
 0x673   : > { %4445 = vmatmul.mubr.msk.f32.vlgmr.msra.gmra.mxu1 %vm1020_vm9, %v4422_v59 }
 0x6a3   : > { %v4436_v62 = vpop.f32.mrf.mxu0 }
 0x6a5   : > { %v1409_v1 = vpop.f32.mrf.mxu0 }
 0x6a6   : > { %4439 = vmatprep.mubr.msk.f32.mxu0 %vm1020_vm9, %v1409_v1 }
 0x6a7   : > { %4440 = vmatmul.mubr.msk.f32.vlgmr.msra.gmra.mxu0 %vm1020_vm9, %v4436_v62 }
 0x6a8   : > { %4448 = vmatpush3.xpose.msk.msra.mxu0 %vm1020_vm9, %v1587_v57  ;;  %4451 = vmatprep.mubr.msk.f32.mxu0 %vm1020_vm9, %v1581_v61 }
 0x6a9   : > { %4449 = vmatprep.subr.msk.mxu0 %vm1020_vm9, %v1585_v0 }
 0x6ac   : > { %4450 = vmatpush3.xpose.msk.msra.mxu0 %vm1020_vm9, %v1585_v0 }
 0x6ad   : > { %4466 = vmatprep.subr.msk.mxu0 %vm1020_vm9, %v1871_v2 }
 0x6af   : > { %4452 = vmatmul.mubr.msk.f32.vlgmr.msra.gmra.mxu0 %vm1020_vm9, %v1583_v3 }
 0x6b0   : > { %4467 = vmatpush3.xpose.msk.msra.mxu0 %vm1020_vm9, %v1871_v2  ;;  %4470 = vmatprep.mubr.msk.f32.mxu0 %vm1020_vm9, %v1865_v4 }
 0x6b1   : > { %4468 = vmatprep.subr.msk.mxu0 %vm1020_vm9, %v1869_v5 }
 0x6b4   : > { %4469 = vmatpush3.xpose.msk.msra.mxu0 %vm1020_vm9, %v1869_v5 }
 0x6b7   : > { %4471 = vmatmul.mubr.msk.f32.vlgmr.msra.gmra.mxu0 %vm1020_vm9, %v1867_v6  ;;  %v918_v6 = vld [vmem:[%s5727_s9 + $0x18] sm:$0xff] }
 0x733   : > { %v4446_v7 = vpop.f32.mrf.mxu1 }
 0x735   : > { %v1571_v61 = vpop.f32.mrf.mxu1 }
 0x767   : > { %v4441_v8 = vpop.f32.mrf.mxu0 }
 0x768   : > { %v5336_v9 = vadd.f32 %v4446_v7, %v4441_v8 }
 0x769   : > { %v5338_v10 = vpop.f32.mrf.mxu0 }
 0x76a   : > { %v1572_v8 = vadd.f32 %v1571_v61, %v5338_v10 }
 0x76f   : > { %v4453_v11 = vpop.f32.mrf.mxu0 }
 0x770   : > { %v1668_v12 = vadd.f32 %v4453_v11, %v5268_v63 }
 0x771   : > { %v1662_v13 = vpop.f32.mrf.mxu0 }
 0x772   : > { %v1663_v15 = vadd.f32 %v5268_v63, %v1662_v13  ;;  %v1674_v16 = vsel %vm1108_vm10, %v1668_v12, -inf }
 0x773   : > { %1675 = vmax.xlane.f32.xlu1 %v1674_v16 }
 0x774   : > { %v1671_v17 = vsel %vm1104_vm11, %v1663_v15, -inf }
 0x775   : > { %1672 = vmax.xlane.f32.xlu0 %v1671_v17  ;;  %v2150_v17 = vsub.s32 1, %v5216_v40 }
 0x777   : > { %v4472_v18 = vpop.f32.mrf.mxu0 }
 0x778   : > { %v1952_v37 = vadd.f32 %v4472_v18, %v5268_v63  ;;  %v2151_v18 = vrot.slane %v5231_v51, %v2150_v17 }
 0x779   : > { %v1946_v19 = vpop.f32.mrf.mxu0 }
 0x77a   : > { %v1947_v20 = vadd.f32 %v5268_v63, %v1946_v19  ;;  %v1958_v39 = vsel %vm1108_vm10, %v1952_v37, -inf }
 0x77c   : > { %v1955_v21 = vsel %vm1104_vm11, %v1947_v20, -inf }
 0x784   : > { %1695 = vrot.lane.b32.xlu1 %v5236_v54, %s5744_s15 }
 0x7a8   : > { %1956 = vmax.xlane.f32.xlu1 %v1955_v21 }
 0x7fc   : > { %v1676_v22 = vpop.xlane.xlu1 %1675 }
 0x7fd   : > { %v1678_v23 = vsub.f32 %v1668_v12, %v1676_v22 }
 0x7fe   : > { %v1673_v24 = vpop.xlane.xlu0 %1672 }
 0x7ff   : > { %v1681_v25 = vmul.f32 1.442695, %v1678_v23  ;;  %v1677_v26 = vsub.f32 %v1663_v15, %v1673_v24 }
 0x800   : > { %v1696_v27 = vpop.permute.xlu1 %1695 }
 0x801   : > { %4719 = vpow2.f32 %v1681_v25  ;;  %v1679_v28 = vmul.f32 1.442695, %v1677_v26  ;;  %4454 = vmatprep.subr.msk.mxu1 %vm1139_vm12, %v1696_v27 }
 0x802   : > { %4455 = vmatpush3.msk.msra.mxu1 %vm1139_vm12, %v1696_v27 }
 0x803   : > { %4721 = vpow2.f32 %v1679_v28 }
 0x80e   : > { %v4720_v29 = vpop.eup %4719 }
 0x80f   : > { %v1686_v30 = vsel %vm1108_vm10, %v4720_v29, 0.0 }
 0x810   : > { %v4722_v31 = vpop.eup %4721  ;;  %1687 = vadd.xlane.f32.xlu0 %v1686_v30 }
 0x811   : > { %v1683_v32 = vsel %vm1104_vm11, %v4722_v31, 0.0 }
 0x814   : > { %1684 = vadd.xlane.f32.xlu0 %v1683_v32 }
 0x82a   : > { %1693 = vrot.lane.b32.xlu0 %v5238_v56, %s5744_s15 }
 0x831   : > { %v1957_v33 = vpop.xlane.xlu1 %1956 }
 0x832   : > { %v1961_v34 = vsub.f32 %v1947_v20, %v1957_v33 }
 0x834   : > { %v1963_v35 = vmul.f32 1.442695, %v1961_v34 }
 0x836   : > { %4723 = vpow2.f32 %v1963_v35 }
 0x843   : > { %v4724_v36 = vpop.eup %4723 }
 0x844   : > { %v1967_v38 = vsel %vm1104_vm11, %v4724_v36, 0.0 }
 0x845   : > { %1968 = vadd.xlane.f32.xlu1 %v1967_v38  ;;  %v2196_v38 = vld [vmem:[%s5728_s10] sm:$0xff] }
 0x849   : > { %1959 = vmax.xlane.f32.xlu0 %v1958_v39 }
 0x856   : > { %1979 = vrot.lane.b32.xlu1 %v5236_v54, %s5742_s18 }
 0x899   : > { %v1688_v41 = vpop.xlane.xlu0 %1687 }
 0x89a   : > { %4725 = vrcp.f32 %v1688_v41 }
 0x89d   : > { %v1685_v42 = vpop.xlane.xlu0 %1684 }
 0x89e   : > { %4727 = vrcp.f32 %v1685_v42 }
 0x8a1   : > { %v1694_v43 = vpop.permute.xlu0 %1693 }
 0x8a2   : > { %4456 = vmatprep.subr.mxu1 %v1694_v43 }
 0x8a3   : > { %4457 = vmatpush3.msra.mxu1 %v1694_v43 }
 0x8a4   : > { %4461 = vmatprep.subr.mxu1 %v917_v44 }
 0x8a7   : > { %v4726_v45 = vpop.eup %4725 }
 0x8a8   : > { %v1692_v52 = vmul.f32 %v4726_v45, %v4720_v29 }
 0x8ab   : > { %v4728_v46 = vpop.eup %4727 }
 0x8ac   : > { %v1690_v47 = vmul.f32 %v4728_v46, %v4722_v31  ;;  %v2186_v46 = vsub.s32 2, %v5216_v40 }
 0x8ae   : > { %4458 = vmatprep.mubr.msk.f32.mxu1 %vm1104_vm11, %v1690_v47 }
 0x8af   : > { %4459 = vmatmul.mubr.msk.f32.vlgmr.msra.gmra.mxu1 %vm1104_vm11, %v1692_v52  ;;  %v2187_v52 = vrot.slane %v5231_v51, %v2186_v46 }
 0x8b0   : > { %4462 = vmatpush3.msra.mxu1 %v917_v44 }
 0x8ce   : > { %v1969_v54 = vpop.xlane.xlu1 %1968 }
 0x8d2   : > { %v1980_v53 = vpop.permute.xlu1 %1979  ;;  %v1960_v55 = vpop.xlane.xlu0 %1959 }
 0x8d3   : > { %v1962_v57 = vsub.f32 %v1952_v37, %v1960_v55  ;;  %4473 = vmatprep.subr.msk.mxu1 %vm1139_vm12, %v1980_v53  ;;  %v2197_v37 = vld [vmem:[%s5728_s10 + $0x8] sm:$0xff] }
 0x8d5   : > { %v1965_v58 = vmul.f32 1.442695, %v1962_v57 }
 0x8d7   : > { %4729 = vpow2.f32 %v1965_v58 }
 0x8d8   : > { %4731 = vrcp.f32 %v1969_v54  ;;  %v2192_v54 = vsub.s32 3, %v5216_v40 }
 0x8e4   : > { %v4730_v59 = vpop.eup %4729 }
 0x8e5   : > { %v1970_v60 = vsel %vm1108_vm10, %v4730_v59, 0.0  ;;  %v4732_v62 = vpop.eup %4731 }
 0x8e6   : > { %1971 = vadd.xlane.f32.xlu0 %v1970_v60  ;;  %v1974_v3 = vmul.f32 %v4732_v62, %v4724_v36  ;;  %v2198_v36 = vld [vmem:[%s5728_s10 + $0x10] sm:$0xff] }
 0x8fc   : > { %1977 = vrot.lane.b32.xlu0 %v5238_v56, %s5742_s18  ;;  %s5775_s18 = smov 48  }
 0x96f   : > { %v4460_v0 = vpop.f32.mrf.mxu1  ;;  %v1972_v1 = vpop.xlane.xlu0 %1971 }
 0x970   : > { %4733 = vrcp.f32 %v1972_v1  ;;  %v2287_v1 = vld [vmem:[%s5729_s11] sm:$0xff] }
 0x971   : > { %v1772_v2 = vpop.f32.mrf.mxu1 }
 0x972   : > { %4463 = vmatprep.mubr.msk.f32.mxu1 %vm1020_vm9, %v1772_v2  ;;  %v2202_v2 = vsub.s32 4, %v5216_v40 }
 0x973   : > { %4464 = vmatmul.mubr.msk.f32.vlgmr.msra.gmra.mxu1 %vm1020_vm9, %v4460_v0  ;;  %v1978_v4 = vpop.permute.xlu0 %1977  ;;  %v2288_v0 = vld [vmem:[%s5729_s11 + $0x8] sm:$0xff] }
 0x974   : > { %4474 = vmatpush3.msk.msra.mxu1 %vm1139_vm12, %v1980_v53  ;;  %4477 = vmatprep.mubr.msk.f32.mxu1 %vm1104_vm11, %v1974_v3  ;;  %v2203_v3 = vrot.slane %v5231_v51, %v2202_v2 }
 0x975   : > { %4475 = vmatprep.subr.mxu1 %v1978_v4 }
 0x976   : > { %4476 = vmatpush3.msra.mxu1 %v1978_v4 }
 0x977   : > { %4480 = vmatprep.subr.mxu1 %v918_v6 }
 0x97d   : > { %v4734_v56 = vpop.eup %4733 }
 0x97e   : > { %v1976_v5 = vmul.f32 %v4734_v56, %v4730_v59  ;;  %v2193_v59 = vrot.slane %v5231_v51, %v2192_v54 }
 0x980   : > { %4478 = vmatmul.mubr.msk.f32.vlgmr.msra.gmra.mxu1 %vm1104_vm11, %v1976_v5 }
 0x981   : > { %4481 = vmatpush3.msra.mxu1 %v918_v6 }
 0x982   : > { %4496 = vmatprep.subr.mxu1 %v2288_v0 }
 0xa33   : > { %v4465_v7 = vpop.f32.mrf.mxu1 }
 0xa34   : > { %v1863_v11 = vadd.f32 %v4465_v7, %v5336_v9 }
 0xa35   : > { %v1853_v12 = vpop.f32.mrf.mxu1 }
 0xa36   : > { %v1862_v13 = vadd.f32 %v1853_v12, %v1572_v8 }
 0xa40   : > { %v4479_v15 = vpop.f32.mrf.mxu1 }
 0xa42   : > { %v2056_v16 = vpop.f32.mrf.mxu1 }
 0xa43   : > { %4482 = vmatprep.mubr.msk.f32.mxu1 %vm1020_vm9, %v2056_v16 }
 0xa44   : > { %4483 = vmatmul.mubr.msk.f32.vlgmr.msra.gmra.mxu1 %vm1020_vm9, %v4479_v15 }
 0xa45   : > { %4497 = vmatpush3.msra.mxu1 %v2288_v0 }
 0xa46   : > { %4498 = vmatprep.subr.mxu1 %v2287_v1 }
 0xa47   : > { %4499 = vmatpush3.msra.mxu1 %v2287_v1 }
 0xb04   : > { %v4484_v19 = vpop.f32.mrf.mxu1 }
 0xb05   : > { %v2147_v20 = vadd.f32 %v4484_v19, %v1863_v11  ;;  %v2291_v11 = vsub.s32 5, %v5216_v40 }
 0xb06   : > { %v2137_v21 = vpop.f32.mrf.mxu1 }
 0xb07   : > { %v2153_v10 = vadd.f32 %v2151_v18, %v2147_v20  ;;  %v2146_v22 = vadd.f32 %v2137_v21, %v1862_v13  ;;  %v2292_v12 = vrot.slane %v5231_v51, %v2291_v11 }
 0xb09   : > { %v2152_v9 = vadd.f32 %v2151_v18, %v2146_v22  ;;  %v2155_v23 = vadd.f32 %v2153_v10, %v5226_v49 }
 0xb0b   : > { %v2160_v24 = vsel %vm2159_vm13, %v2155_v23, 0.0  ;;  %v2154_v25 = vadd.f32 %v2152_v9, %v5222_v48  ;;  %v2199_v48 = vld [vmem:[%s5728_s10 + $0x18] sm:$0xff] }
 0xb0c   : > { %2161 = vadd.xlane.f32.xlu0 %v2160_v24  ;;  %4485 = vmatprep.subr.mxu0 %v2199_v48 }
 0xb0d   : > { %v2156_v26 = vsel %vm721_vm5, %v2154_v25, 0.0  ;;  %4486 = vmatpush3.msra.mxu0 %v2199_v48 }
 0xb0e   : > { %2157 = vadd.xlane.f32.xlu1 %v2156_v26  ;;  %4487 = vmatprep.subr.mxu0 %v2198_v36 }
 0xb0f   : > { %4488 = vmatpush3.msra.mxu0 %v2198_v36 }
 0xb10   : > { %4489 = vmatprep.subr.mxu0 %v2197_v37 }
 0xb11   : > { %4490 = vmatpush3.msra.mxu0 %v2197_v37 }
 0xb12   : > { %4491 = vmatprep.subr.mxu0 %v2196_v38 }
 0xb13   : > { %4492 = vmatpush3.msra.mxu0 %v2196_v38 }
 0xb95   : > { %v2162_v27 = vpop.xlane.xlu0 %2161 }
 0xb96   : > { %v2165_v28 = vmul.f32 0.03125, %v2162_v27 }
 0xb97   : > { %v2158_v29 = vpop.xlane.xlu1 %2157 }
 0xb98   : > { %v2167_v30 = vsub.f32 %v2155_v23, %v2165_v28  ;;  %v2164_v31 = vmul.f32 0.03125, %v2158_v29 }
 0xb9a   : > { %v2166_v32 = vsub.f32 %v2154_v25, %v2164_v31  ;;  %v2169_v33 = vmul.f32 %v2167_v30, %v2167_v30  ;;  %v4165_v31 = vld [vmem:[%s5726_s8 + $0x38] sm:$0xff] }
 0xb9b   : > { %4503 = vmatprep.subr.mxu1 %v4165_v31 }
 0xb9c   : > { %v2173_v34 = vsel %vm2159_vm13, %v2169_v33, 0.0  ;;  %v2168_v35 = vmul.f32 %v2166_v32, %v2166_v32  ;;  %v4163_v33 = vld [vmem:[%s5726_s8 + $0x28] sm:$0xff] }
 0xb9d   : > { %2174 = vadd.xlane.f32.xlu0 %v2173_v34  ;;  %v4162_v34 = vld [vmem:[%s5726_s8 + $0x20] sm:$0xff] }
 0xb9e   : > { %v2170_v49 = vsel %vm721_vm5, %v2168_v35, 0.0 }
 0xb9f   : > { %2171 = vadd.xlane.f32.xlu1 %v2170_v49 }
 0xc26   : > { %v2175_v39 = vpop.xlane.xlu0 %2174 }
 0xc27   : > { %v2177_v41 = vmul.f32 0.03125, %v2175_v39  ;;  %v2404_v39 = vsub.s32 6, %v5216_v40 }
 0xc28   : > { %v2172_v42 = vpop.xlane.xlu1 %2171 }
 0xc29   : > { %v2179_v43 = vadd.f32 1e-05, %v2177_v41  ;;  %v2176_v44 = vmul.f32 0.03125, %v2172_v42  ;;  %v2405_v42 = vrot.slane %v5231_v51, %v2404_v39 }
 0xc2b   : > { %4735 = vrsqrt.f32 %v2179_v43  ;;  %v2178_v45 = vadd.f32 1e-05, %v2176_v44  ;;  %v2410_v43 = vsub.s32 7, %v5216_v40 }
 0xc2d   : > { %4737 = vrsqrt.f32 %v2178_v45 }
 0xc38   : > { %v4736_v47 = vpop.eup %4735 }
 0xc39   : > { %v2183_v53 = vmul.f32 %v4736_v47, %v2167_v30 }
 0xc3a   : > { %v4738_v55 = vpop.eup %4737 }
 0xc3b   : > { %v2182_v57 = vmul.f32 %v4738_v55, %v2166_v32  ;;  %v2189_v58 = vmul.f32 %v2187_v52, %v2183_v53  ;;  %v4164_v32 = vld [vmem:[%s5726_s8 + $0x30] sm:$0xff]  ;;  %v2411_v53 = vrot.slane %v5231_v51, %v2410_v43 }
 0xc3d   : > { %v2188_v60 = vmul.f32 %v2187_v52, %v2182_v57  ;;  %v2195_v62 = vadd.f32 %v2193_v59, %v2189_v58 }
 0xc3f   : > { %v2194_v61 = vadd.f32 %v2193_v59, %v2188_v60  ;;  %v5460_v59 = vld [vmem:[#allocation7 + $0x8] sm:$0xff] }
 0xc40   : > { %v2429_v60 = vrot.slane %v5460_v59, %v925_v50 }
 0xc41   : > { %4493 = vmatprep.mubr.msk.f32.mxu0 %vm721_vm5, %v2194_v61 }
 0xc42   : > { %4494 = vmatmul.mubr.msk.f32.vlgmr.msra.gmra.mxu0 %vm721_vm5, %v2195_v62 }
 0xd02   : > { %v4495_v4 = vpop.f32.mrf.mxu0 }
 0xd03   : > { %v2282_v56 = vadd.f32 %v4495_v4, %v2203_v3 }
 0xd04   : > { %v2276_v5 = vpop.f32.mrf.mxu0 }
 0xd05   : > { %v2277_v6 = vadd.f32 %v2276_v5, %v2203_v3  ;;  %v2286_v8 = vmax.f32 %v2282_v56, 0.0 }
 0xd07   : > { %v2285_v7 = vmax.f32 %v2277_v6, 0.0 }
 0xd09   : > { %4500 = vmatprep.mubr.msk.f32.mxu1 %vm631_vm2, %v2285_v7 }
 0xd0a   : > { %4501 = vmatmul.mubr.msk.f32.vlgmr.msra.gmra.mxu1 %vm631_vm2, %v2286_v8 }
 0xd0b   : > { %4504 = vmatpush3.msra.mxu1 %v4165_v31 }
 0xd0c   : > { %4505 = vmatprep.subr.mxu1 %v4164_v32 }
 0xd0d   : > { %4506 = vmatpush3.msra.mxu1 %v4164_v32 }
 0xd0e   : > { %4507 = vmatprep.subr.mxu1 %v4163_v33 }
 0xd0f   : > { %4508 = vmatpush3.msra.mxu1 %v4163_v33 }
 0xd10   : > { %4509 = vmatprep.subr.mxu1 %v4162_v34 }
 0xd11   : > { %4510 = vmatpush3.msra.mxu1 %v4162_v34 }
 0xdca   : > { %v4502_v13 = vpop.f32.mrf.mxu1 }
 0xdcb   : > { %v2371_v15 = vadd.f32 %v4502_v13, %v2292_v12 }
 0xdcc   : > { %v2365_v16 = vpop.f32.mrf.mxu1 }
 0xdcd   : > { %v2366_v18 = vadd.f32 %v2365_v16, %v2292_v12  ;;  %v2375_v19 = vadd.f32 %v2371_v15, %v2195_v62 }
 0xdcf   : > { %v2379_v20 = vsel %vm2159_vm13, %v2375_v19, 0.0  ;;  %v2374_v21 = vadd.f32 %v2366_v18, %v2194_v61 }
 0xdd0   : > { %2380 = vadd.xlane.f32.xlu0 %v2379_v20 }
 0xdd1   : > { %v2376_v10 = vsel %vm721_vm5, %v2374_v21, 0.0 }
 0xdd2   : > { %2377 = vadd.xlane.f32.xlu1 %v2376_v10 }
 0xe59   : > { %v2381_v22 = vpop.xlane.xlu0 %2380 }
 0xe5a   : > { %v2383_v9 = vmul.f32 0.03125, %v2381_v22 }
 0xe5b   : > { %v2378_v23 = vpop.xlane.xlu1 %2377 }
 0xe5c   : > { %v2385_v24 = vsub.f32 %v2375_v19, %v2383_v9  ;;  %v2382_v25 = vmul.f32 0.03125, %v2378_v23 }
 0xe5e   : > { %v2384_v26 = vsub.f32 %v2374_v21, %v2382_v25  ;;  %v2387_v27 = vmul.f32 %v2385_v24, %v2385_v24 }
 0xe60   : > { %v2391_v28 = vsel %vm2159_vm13, %v2387_v27, 0.0  ;;  %v2386_v29 = vmul.f32 %v2384_v26, %v2384_v26 }
 0xe61   : > { %2392 = vadd.xlane.f32.xlu0 %v2391_v28 }
 0xe62   : > { %v2388_v30 = vsel %vm721_vm5, %v2386_v29, 0.0 }
 0xe63   : > { %2389 = vadd.xlane.f32.xlu1 %v2388_v30 }
 0xeea   : > { %v2393_v35 = vpop.xlane.xlu0 %2392 }
 0xeeb   : > { %v2395_v49 = vmul.f32 0.03125, %v2393_v35 }
 0xeec   : > { %v2390_v48 = vpop.xlane.xlu1 %2389 }
 0xeed   : > { %v2397_v36 = vadd.f32 1e-05, %v2395_v49  ;;  %v2394_v37 = vmul.f32 0.03125, %v2390_v48 }
 0xeef   : > { %4739 = vrsqrt.f32 %v2397_v36  ;;  %v2396_v38 = vadd.f32 1e-05, %v2394_v37 }
 0xef1   : > { %4741 = vrsqrt.f32 %v2396_v38 }
 0xefc   : > { %v4740_v41 = vpop.eup %4739 }
 0xefd   : > { %v2401_v44 = vmul.f32 %v4740_v41, %v2385_v24 }
 0xefe   : > { %v4742_v45 = vpop.eup %4741 }
 0xeff   : > { %v2400_v47 = vmul.f32 %v4742_v45, %v2384_v26  ;;  %v2407_v52 = vmul.f32 %v2405_v42, %v2401_v44 }
 0xf01   : > { %v2406_v55 = vmul.f32 %v2405_v42, %v2400_v47  ;;  %v5454_v58 = vadd.f32 %v2411_v53, %v2407_v52 }
 0xf03   : > { %v5452_v57 = vadd.f32 %v2411_v53, %v2406_v55 }
 0xf05   : > { %4511 = vmatprep.mubr.msk.f32.mxu1 %vm721_vm5, %v5452_v57 }
 0xf06   : > { %4512 = vmatmul.mubr.msk.f32.vlgmr.msra.gmra.mxu1 %vm721_vm5, %v5454_v58 }
 0xfc6   : > { %v4513_v61 = vpop.f32.mrf.mxu1 }
 0xfc7   : > { %v5465_v62 = vadd.f32 %v4513_v61, %v2429_v60 }
 0xfc8   : > { %v2502_v51 = vpop.f32.mrf.mxu1 }
 0xfc9   : > { %v5467_v0 = vadd.f32 %v2502_v51, %v2429_v60  ;;  %2515 = vrot.lane.b32.xlu1 %v5465_v62, %s4940_s25 }
 0xfcb   : > { %2513 = vrot.lane.b32.xlu0 %v5467_v0, %s4940_s25  ;;  %4518 = vmatprep.mubr.msk.f32.mxu0 %vm1020_vm9, %v5467_v0  ;;  %s5773_s25 = smov 104  }
 0xfcd   : > { %2716 = vrot.lane.b32.xlu1 %v5465_v62, %s4939_s12 }
 0xfcf   : > { %2710 = vrot.lane.b32.xlu0 %v5467_v0, %s4941_s28 }
 0xfd1   : > { %2714 = vrot.lane.b32.xlu1 %v5467_v0, %s4939_s12  ;;  %s5772_s12 = smov 72  }
 0xfd5   : > { %2712 = vrot.lane.b32.xlu1 %v5465_v62, %s4941_s28 }
0x103b   : > { %v2516_v50 = vpop.permute.xlu1 %2515 }
0x103c   : > { %4514 = vmatprep.subr.msk.mxu0 %vm1020_vm9, %v2516_v50 }
0x103d   : > { %4515 = vmatpush3.xpose.msk.msra.mxu0 %vm1020_vm9, %v2516_v50  ;;  %v2514_v1 = vpop.permute.xlu0 %2513  ;;  %v4159_v50 = vld [vmem:[%s5727_s9 + $0x28] sm:$0xff] }
0x103e   : > { %4516 = vmatprep.subr.msk.mxu0 %vm1020_vm9, %v2514_v1 }
0x103f   : > { %v2717_v3 = vpop.permute.xlu1 %2716 }
0x1041   : > { %4517 = vmatpush3.xpose.msk.msra.mxu0 %vm1020_vm9, %v2514_v1  ;;  %v2711_v4 = vpop.permute.xlu0 %2710 }
0x1042   : > { %4528 = vmatprep.subr.msk.mxu0 %vm1020_vm9, %v2717_v3 }
0x1043   : > { %v2715_v56 = vpop.permute.xlu1 %2714 }
0x1044   : > { %4519 = vmatmul.mubr.msk.f32.vlgmr.msra.gmra.mxu0 %vm1020_vm9, %v5465_v62 }
0x1045   : > { %4529 = vmatpush3.xpose.msk.msra.mxu0 %vm1020_vm9, %v2717_v3  ;;  %4532 = vmatprep.mubr.msk.f32.mxu0 %vm1020_vm9, %v2711_v4 }
0x1046   : > { %4530 = vmatprep.subr.msk.mxu0 %vm1020_vm9, %v2715_v56 }
0x1047   : > { %v2713_v5 = vpop.permute.xlu1 %2712 }
0x1049   : > { %4531 = vmatpush3.xpose.msk.msra.mxu0 %vm1020_vm9, %v2715_v56 }
0x104c   : > { %4533 = vmatmul.mubr.msk.f32.vlgmr.msra.gmra.mxu0 %vm1020_vm9, %v2713_v5 }
0x1104   : > { %v4520_v6 = vpop.f32.mrf.mxu0 }
0x1105   : > { %v2597_v7 = vadd.f32 %v4520_v6, %v5268_v63  ;;  %v4158_v6 = vld [vmem:[%s5727_s9 + $0x20] sm:$0xff] }
0x1106   : > { %v2591_v8 = vpop.f32.mrf.mxu0  ;;  %4547 = vmatprep.subr.mxu0 %v4158_v6 }
0x1107   : > { %v2592_v12 = vadd.f32 %v5268_v63, %v2591_v8  ;;  %v2603_v13 = vsel %vm1108_vm10, %v2597_v7, -inf  ;;  %4548 = vmatpush3.msra.mxu0 %v4158_v6 }
0x1108   : > { %2604 = vmax.xlane.f32.xlu1 %v2603_v13 }
0x1109   : > { %v2600_v15 = vsel %vm1104_vm11, %v2592_v12, -inf }
0x110a   : > { %2601 = vmax.xlane.f32.xlu0 %v2600_v15 }
0x110c   : > { %v4534_v16 = vpop.f32.mrf.mxu0 }
0x110d   : > { %v2798_v20 = vadd.f32 %v4534_v16, %v5268_v63 }
0x110e   : > { %v2792_v18 = vpop.f32.mrf.mxu0 }
0x110f   : > { %v2793_v19 = vadd.f32 %v5268_v63, %v2792_v18  ;;  %v2804_v10 = vsel %vm1108_vm10, %v2798_v20, -inf }
0x1111   : > { %v2801_v21 = vsel %vm1104_vm11, %v2793_v19, -inf }
0x1112   : > { %2802 = vmax.xlane.f32.xlu0 %v2801_v21 }
0x1116   : > { %2805 = vmax.xlane.f32.xlu0 %v2804_v10 }
0x1119   : > { %2624 = vrot.lane.b32.xlu1 %v5465_v62, %s4942_s16 }
0x1191   : > { %v2605_v22 = vpop.xlane.xlu1 %2604 }
0x1192   : > { %v2607_v9 = vsub.f32 %v2597_v7, %v2605_v22 }
0x1193   : > { %v2602_v23 = vpop.xlane.xlu0 %2601 }
0x1194   : > { %v2610_v24 = vmul.f32 1.442695, %v2607_v9  ;;  %v2606_v25 = vsub.f32 %v2592_v12, %v2602_v23 }
0x1195   : > { %v2625_v26 = vpop.permute.xlu1 %2624 }
0x1196   : > { %4743 = vpow2.f32 %v2610_v24  ;;  %v2608_v27 = vmul.f32 1.442695, %v2606_v25  ;;  %4521 = vmatprep.subr.msk.mxu1 %vm1139_vm12, %v2625_v26 }
0x1197   : > { %4522 = vmatpush3.msk.msra.mxu1 %vm1139_vm12, %v2625_v26 }
0x1198   : > { %4745 = vpow2.f32 %v2608_v27 }
0x119b   : > { %v2803_v63 = vpop.xlane.xlu0 %2802 }
0x119c   : > { %v2807_v48 = vsub.f32 %v2793_v19, %v2803_v63 }
0x119e   : > { %v2809_v36 = vmul.f32 1.442695, %v2807_v48 }
0x119f   : > { %v2806_v28 = vpop.xlane.xlu0 %2805 }
0x11a0   : > { %v2808_v29 = vsub.f32 %v2798_v20, %v2806_v28 }
0x11a2   : > { %v2811_v30 = vmul.f32 1.442695, %v2808_v29 }
0x11a3   : > { %v4744_v31 = vpop.eup %4743 }
0x11a4   : > { %4747 = vpow2.f32 %v2811_v30  ;;  %v2615_v32 = vsel %vm1108_vm10, %v4744_v31, 0.0 }
0x11a5   : > { %v4746_v33 = vpop.eup %4745  ;;  %2616 = vadd.xlane.f32.xlu0 %v2615_v32  ;;  %4749 = vpow2.f32 %v2809_v36 }
0x11a6   : > { %v2612_v34 = vsel %vm1104_vm11, %v4746_v33, 0.0 }
0x11a7   : > { %2613 = vadd.xlane.f32.xlu1 %v2612_v34 }
0x11b1   : > { %v4748_v35 = vpop.eup %4747 }
0x11b2   : > { %v2816_v49 = vsel %vm1108_vm10, %v4748_v35, 0.0  ;;  %v4750_v37 = vpop.eup %4749 }
0x11b3   : > { %2817 = vadd.xlane.f32.xlu0 %v2816_v49  ;;  %v2813_v38 = vsel %vm1104_vm11, %v4750_v37, 0.0 }
0x11b8   : > { %2825 = vrot.lane.b32.xlu1 %v5465_v62, %s4943_s23 }
0x11c9   : > { %2622 = vrot.lane.b32.xlu0 %v5467_v0, %s4942_s16 }
0x11cd   : > { %3079 = vrot.lane.b32.xlu0 %v5465_v62, %s4944_s14 }
0x11d1   : > { %3073 = vrot.lane.b32.xlu0 %v5467_v0, %s4945_s17 }
0x11d5   : > { %3363 = vrot.lane.b32.xlu0 %v5465_v62, %s5772_s12 }
0x11d9   : > { %3357 = vrot.lane.b32.xlu0 %v5467_v0, %s5773_s25 }
0x11dc   : > { %2814 = vadd.xlane.f32.xlu1 %v2813_v38 }
0x11ed   : > { %2823 = vrot.lane.b32.xlu1 %v5467_v0, %s4943_s23 }
0x11f1   : > { %3077 = vrot.lane.b32.xlu1 %v5467_v0, %s4944_s14  ;;  %s4215_s14 = sshll.u32 %s5043_s29, 4  ;;  %s4951_s29 = smov [#allocation8]  }
0x11f2   : > { %s5680_s19 = scalar_lea.hbm %s5731_s13, %s4215_s14  ;;  %s4866_s24 = sshll.u32 %s4951_s29, 4  ;;  %s4867_s24 = int_to_ptr.vmem [resolvable:$false] %s4866_s24 }
0x11f3   : > { %s4868_s15 = scalar_lea.vmem %s4867_s24, 32 }
0x11f5   : > { %3075 = vrot.lane.b32.xlu1 %v5465_v62, %s4945_s17  ;;  %s5774_s17 = scalar_lea.vmem [#allocation2], %s5140_s27 }
0x11f6   : > { %v4781_v26 = vld [vmem:[%s5774_s17] ss:$0 sm:$0xff]  ;;  %s508_s17 = scalar_lea.vmem [#allocation8], %s5140_s27 }
0x11f9   : > { %3361 = vrot.lane.b32.xlu1 %v5467_v0, %s5772_s12 }
0x11fd   : > { %3359 = vrot.lane.b32.xlu1 %v5465_v62, %s5773_s25 }
0x122e   : > { %v2617_v41 = vpop.xlane.xlu0 %2616 }
0x122f   : > { %4751 = vrcp.f32 %v2617_v41 }
0x1230   : > { %v2614_v42 = vpop.xlane.xlu1 %2613 }
0x1231   : > { %4753 = vrcp.f32 %v2614_v42 }
0x1234   : > { %v2826_v60 = vpop.permute.xlu1 %2825 }
0x123c   : > { %v2818_v44 = vpop.xlane.xlu0 %2817  ;;  %v4752_v45 = vpop.eup %4751 }
0x123d   : > { %v2621_v55 = vmul.f32 %v4752_v45, %v4744_v31  ;;  %4755 = vrcp.f32 %v2818_v44 }
0x123e   : > { %v4754_v47 = vpop.eup %4753 }
0x123f   : > { %v2619_v52 = vmul.f32 %v4754_v47, %v4746_v33 }
0x1240   : > { %v2623_v53 = vpop.permute.xlu0 %2622 }
0x1241   : > { %4523 = vmatprep.subr.mxu1 %v2623_v53  ;;  %4525 = vmatprep.mubr.msk.f32.mxu1 %vm1104_vm11, %v2619_v52 }
0x1242   : > { %4524 = vmatpush3.msra.mxu1 %v2623_v53 }
0x1243   : > { %4526 = vmatmul.mubr.msk.f32.vlgmr.msra.gmra.mxu1 %vm1104_vm11, %v2621_v55  ;;  %4535 = vmatprep.subr.msk.mxu1 %vm1139_vm12, %v2826_v60 }
0x1244   : > { %4536 = vmatpush3.msk.msra.mxu1 %vm1139_vm12, %v2826_v60  ;;  %v3080_v5 = vpop.permute.xlu0 %3079 }
0x1248   : > { %v3074_v12 = vpop.permute.xlu0 %3073 }
0x124a   : > { %v4756_v1 = vpop.eup %4755 }
0x124b   : > { %v2822_v56 = vmul.f32 %v4756_v1, %v4748_v35 }
0x124c   : > { %v3364_v18 = vpop.permute.xlu0 %3363 }
0x1250   : > { %v3358_v20 = vpop.permute.xlu0 %3357 }
0x1265   : > { %v2815_v61 = vpop.xlane.xlu1 %2814 }
0x1266   : > { %4757 = vrcp.f32 %v2815_v61 }
0x1269   : > { %v2824_v51 = vpop.permute.xlu1 %2823 }
0x126a   : > { %4537 = vmatprep.subr.mxu1 %v2824_v51 }
0x126b   : > { %4538 = vmatpush3.msra.mxu1 %v2824_v51 }
0x126c   : > { %4542 = vmatprep.subr.mxu1 %v4159_v50 }
0x126d   : > { %v3078_v15 = vpop.permute.xlu1 %3077 }
0x1271   : > { %v3076_v19 = vpop.permute.xlu1 %3075 }
0x1273   : > { %v4758_v3 = vpop.eup %4757 }
0x1274   : > { %v2820_v4 = vmul.f32 %v4758_v3, %v4750_v37 }
0x1275   : > { %v3362_v21 = vpop.permute.xlu1 %3361 }
0x1276   : > { %4539 = vmatprep.mubr.msk.f32.mxu1 %vm1104_vm11, %v2820_v4 }
0x1277   : > { %4540 = vmatmul.mubr.msk.f32.vlgmr.msra.gmra.mxu1 %vm1104_vm11, %v2822_v56  ;;  %v4160_v56 = vld [vmem:[%s5727_s9 + $0x30] sm:$0xff] }
0x1278   : > { %4543 = vmatpush3.msra.mxu1 %v4159_v50 }
0x1279   : > { %4552 = vmatprep.subr.msk.mxu1 %vm1020_vm9, %v3080_v5  ;;  %v3360_v10 = vpop.permute.xlu1 %3359 }
0x1303   : > { %v4527_v7 = vpop.f32.mrf.mxu1 }
0x1305   : > { %v2701_v8 = vpop.f32.mrf.mxu1 }
0x1306   : > { %4549 = vmatprep.mubr.msk.f32.mxu0 %vm1020_vm9, %v2701_v8 }
0x1307   : > { %4550 = vmatmul.mubr.msk.f32.vlgmr.msra.gmra.mxu0 %vm1020_vm9, %v4527_v7 }
0x1337   : > { %v4541_v13 = vpop.f32.mrf.mxu1 }
0x1339   : > { %v2902_v16 = vpop.f32.mrf.mxu1 }
0x133a   : > { %4544 = vmatprep.mubr.msk.f32.mxu1 %vm1020_vm9, %v2902_v16 }
0x133b   : > { %4545 = vmatmul.mubr.msk.f32.vlgmr.msra.gmra.mxu1 %vm1020_vm9, %v4541_v13 }
0x133c   : > { %4553 = vmatpush3.xpose.msk.msra.mxu1 %vm1020_vm9, %v3080_v5  ;;  %4556 = vmatprep.mubr.msk.f32.mxu1 %vm1020_vm9, %v3074_v12 }
0x133d   : > { %4554 = vmatprep.subr.msk.mxu1 %vm1020_vm9, %v3078_v15 }
0x1340   : > { %4555 = vmatpush3.xpose.msk.msra.mxu1 %vm1020_vm9, %v3078_v15 }
0x1341   : > { %4571 = vmatprep.subr.msk.mxu1 %vm1020_vm9, %v3364_v18 }
0x1343   : > { %4557 = vmatmul.mubr.msk.f32.vlgmr.msra.gmra.mxu1 %vm1020_vm9, %v3076_v19 }
0x1344   : > { %4572 = vmatpush3.xpose.msk.msra.mxu1 %vm1020_vm9, %v3364_v18  ;;  %4575 = vmatprep.mubr.msk.f32.mxu1 %vm1020_vm9, %v3358_v20 }
0x1345   : > { %4573 = vmatprep.subr.msk.mxu1 %vm1020_vm9, %v3362_v21 }
0x1348   : > { %4574 = vmatpush3.xpose.msk.msra.mxu1 %vm1020_vm9, %v3362_v21 }
0x134b   : > { %4576 = vmatmul.mubr.msk.f32.vlgmr.msra.gmra.mxu1 %vm1020_vm9, %v3360_v10 }
0x13c7   : > { %v4551_v22 = vpop.f32.mrf.mxu0 }
0x13c9   : > { %v3064_v20 = vpop.f32.mrf.mxu0 }
0x13fb   : > { %v4546_v9 = vpop.f32.mrf.mxu1 }
0x13fc   : > { %v5561_v23 = vadd.f32 %v4551_v22, %v4546_v9 }
0x13fd   : > { %v5563_v24 = vpop.f32.mrf.mxu1 }
0x1403   : > { %v4558_v25 = vpop.f32.mrf.mxu1 }
0x1404   : > { %v3161_v27 = vadd.f32 %v4781_v26, %v4558_v25 }
0x1405   : > { %v3155_v63 = vpop.f32.mrf.mxu1 }
0x1406   : > { %v3156_v28 = vadd.f32 %v4781_v26, %v3155_v63  ;;  %v3167_v29 = vsel %vm1108_vm10, %v3161_v27, -inf  ;;  %v4161_v63 = vld [vmem:[%s5727_s9 + $0x38] sm:$0xff] }
0x1407   : > { %3168 = vmax.xlane.f32.xlu1 %v3167_v29  ;;  %v3065_v29 = vadd.f32 %v3064_v20, %v5563_v24 }
0x1408   : > { %v3164_v30 = vsel %vm1104_vm11, %v3156_v28, -inf }
0x1409   : > { %3165 = vmax.xlane.f32.xlu0 %v3164_v30 }
0x140b   : > { %v4577_v31 = vpop.f32.mrf.mxu1 }
0x140c   : > { %v3445_v61 = vadd.f32 %v4781_v26, %v4577_v31 }
0x140d   : > { %v3439_v32 = vpop.f32.mrf.mxu1 }
0x140e   : > { %v3440_v33 = vadd.f32 %v4781_v26, %v3439_v32  ;;  %v3451_v50 = vsel %vm1108_vm10, %v3445_v61, -inf }
0x1410   : > { %v3448_v34 = vsel %vm1104_vm11, %v3440_v33, -inf }
0x1418   : > { %3188 = vrot.lane.b32.xlu1 %v5465_v62, %s5775_s18 }
0x143c   : > { %3449 = vmax.xlane.f32.xlu1 %v3448_v34 }
0x1490   : > { %v3169_v35 = vpop.xlane.xlu1 %3168 }
0x1491   : > { %v3171_v49 = vsub.f32 %v3161_v27, %v3169_v35  ;;  %v3644_v35 = vrot.slane %v5460_v59, %v2150_v17 }
0x1492   : > { %v3166_v48 = vpop.xlane.xlu0 %3165 }
0x1493   : > { %v3174_v36 = vmul.f32 1.442695, %v3171_v49  ;;  %v3170_v37 = vsub.f32 %v3156_v28, %v3166_v48 }
0x1494   : > { %v3189_v38 = vpop.permute.xlu1 %3188 }
0x1495   : > { %4759 = vpow2.f32 %v3174_v36  ;;  %v3172_v41 = vmul.f32 1.442695, %v3170_v37  ;;  %4559 = vmatprep.subr.msk.mxu0 %vm1139_vm12, %v3189_v38 }
0x1496   : > { %4560 = vmatpush3.msk.msra.mxu0 %vm1139_vm12, %v3189_v38 }
0x1497   : > { %4761 = vpow2.f32 %v3172_v41 }
0x14a2   : > { %v4760_v42 = vpop.eup %4759 }
0x14a3   : > { %v3179_v44 = vsel %vm1108_vm10, %v4760_v42, 0.0 }
0x14a4   : > { %v4762_v45 = vpop.eup %4761  ;;  %3180 = vadd.xlane.f32.xlu0 %v3179_v44 }
0x14a5   : > { %v3176_v47 = vsel %vm1104_vm11, %v4762_v45, 0.0 }
0x14a8   : > { %3177 = vadd.xlane.f32.xlu0 %v3176_v47 }
0x14be   : > { %3186 = vrot.lane.b32.xlu0 %v5467_v0, %s5775_s18  ;;  %s3982_s18 = sshll.u32 %s508_s17, 4  ;;  %s3983_s18 = int_to_ptr.vmem [resolvable:$true] %s3982_s18 }
0x14bf   : > { %s4862_s30 = scalar_lea.vmem %s3983_s18, 16  ;;  %p4869_p6 = scmp.lt.s32.totalorder %s3983_s18, %s4867_s24 }
0x14c0   : > { %p4863_p0 = scmp.ne.s32.totalorder %s3983_s18, %s4862_s30  ;;  %p4870_p9 = scmp.lt.s32.totalorder %s4868_s15, %s4862_s30 }
0x14c2   : > { %p4864_p2 = pnand %p4863_p0, %p5777_p1  ;;  %p4871_p12 = por %p4870_p9, %p4869_p6 }
0x14c4   : > { %p4865_p4 = pneg %p4864_p2 }
0x14c5   : > { %v3450_v52 = vpop.xlane.xlu1 %3449 }
0x14c6   : > { %v3454_v53 = vsub.f32 %v3440_v33, %v3450_v52  ;;  %p4872_p3 = pnand %p4871_p12, %p4865_p4 }
0x14c8   : > { %v3456_v55 = vmul.f32 1.442695, %v3454_v53 }
0x14ca   : > { %4763 = vpow2.f32 %v3456_v55 }
0x14d7   : > { %v4764_v60 = vpop.eup %4763 }
0x14d8   : > { %v3460_v51 = vsel %vm1104_vm11, %v4764_v60, 0.0 }
0x14d9   : > { %3461 = vadd.xlane.f32.xlu1 %v3460_v51 }
0x14dd   : > { %3452 = vmax.xlane.f32.xlu0 %v3451_v50  ;;  %v4206_v50 = vld [vmem:[%s5728_s10 + $0x30] sm:$0xff] }
0x14ea   : > { %3472 = vrot.lane.b32.xlu1 %v5465_v62, %s5776_s22 }
0x152d   : > { %v3181_v1 = vpop.xlane.xlu0 %3180 }
0x152e   : > { %4765 = vrcp.f32 %v3181_v1  ;;  %v4205_v1 = vld [vmem:[%s5728_s10 + $0x28] sm:$0xff] }
0x1531   : > { %v3178_v3 = vpop.xlane.xlu0 %3177 }
0x1532   : > { %4767 = vrcp.f32 %v3178_v3  ;;  %v4204_v3 = vld [vmem:[%s5728_s10 + $0x20] sm:$0xff] }
0x1535   : > { %v3187_v4 = vpop.permute.xlu0 %3186 }
0x1536   : > { %4561 = vmatprep.subr.mxu0 %v3187_v4 }
0x1537   : > { %4562 = vmatpush3.msra.mxu0 %v3187_v4 }
0x1538   : > { %4566 = vmatprep.subr.mxu0 %v4160_v56 }
0x153b   : > { %v4766_v5 = vpop.eup %4765 }
0x153c   : > { %v3185_v8 = vmul.f32 %v4766_v5, %v4760_v42 }
0x153f   : > { %v4768_v6 = vpop.eup %4767 }
0x1540   : > { %v3183_v7 = vmul.f32 %v4768_v6, %v4762_v45 }
0x1542   : > { %4563 = vmatprep.mubr.msk.f32.mxu0 %vm1104_vm11, %v3183_v7 }
0x1543   : > { %4564 = vmatmul.mubr.msk.f32.vlgmr.msra.gmra.mxu0 %vm1104_vm11, %v3185_v8 }
0x1544   : > { %4567 = vmatpush3.msra.mxu0 %v4160_v56 }
0x1562   : > { %v3462_v62 = vpop.xlane.xlu1 %3461 }
0x1566   : > { %v3473_v12 = vpop.permute.xlu1 %3472  ;;  %v3453_v13 = vpop.xlane.xlu0 %3452 }
0x1567   : > { %v3455_v15 = vsub.f32 %v3445_v61, %v3453_v13  ;;  %4578 = vmatprep.subr.msk.mxu0 %vm1139_vm12, %v3473_v12 }
0x1569   : > { %v3458_v16 = vmul.f32 1.442695, %v3455_v15 }
0x156b   : > { %4769 = vpow2.f32 %v3458_v16 }
0x156c   : > { %4771 = vrcp.f32 %v3462_v62 }
0x1578   : > { %v4770_v18 = vpop.eup %4769 }
0x1579   : > { %v3463_v19 = vsel %vm1108_vm10, %v4770_v18, 0.0  ;;  %v4772_v21 = vpop.eup %4771 }
0x157a   : > { %3464 = vadd.xlane.f32.xlu0 %v3463_v19  ;;  %v3467_v25 = vmul.f32 %v4772_v21, %v4764_v60  ;;  %v3684_v19 = vrot.slane %v5460_v59, %v2192_v54  ;;  %v3695_v54 = vrot.slane %v5460_v59, %v2202_v2 }
0x1590   : > { %3470 = vrot.lane.b32.xlu0 %v5467_v0, %s5776_s22 }
0x1603   : > { %v4565_v10 = vpop.f32.mrf.mxu0  ;;  %v3465_v22 = vpop.xlane.xlu0 %3464 }
0x1604   : > { %4773 = vrcp.f32 %v3465_v22  ;;  %v4211_v22 = vld [vmem:[%s5729_s11 + $0x18] sm:$0xff] }
0x1605   : > { %v3265_v9 = vpop.f32.mrf.mxu0 }
0x1606   : > { %4568 = vmatprep.mubr.msk.f32.mxu0 %vm1020_vm9, %v3265_v9 }
0x1607   : > { %4569 = vmatmul.mubr.msk.f32.vlgmr.msra.gmra.mxu0 %vm1020_vm9, %v4565_v10  ;;  %v3471_v26 = vpop.permute.xlu0 %3470 }
0x1608   : > { %4579 = vmatpush3.msk.msra.mxu0 %vm1139_vm12, %v3473_v12  ;;  %4582 = vmatprep.mubr.msk.f32.mxu0 %vm1104_vm11, %v3467_v25  ;;  %v3678_v12 = vrot.slane %v5460_v59, %v2186_v46  ;;  %v4210_v46 = vld [vmem:[%s5729_s11 + $0x10] sm:$0xff] }
0x1609   : > { %4580 = vmatprep.subr.mxu0 %v3471_v26 }
0x160a   : > { %4581 = vmatpush3.msra.mxu0 %v3471_v26 }
0x160b   : > { %4585 = vmatprep.subr.mxu0 %v4161_v63 }
0x1611   : > { %v4774_v0 = vpop.eup %4773 }
0x1612   : > { %v3469_v27 = vmul.f32 %v4774_v0, %v4770_v18 }
0x1614   : > { %4583 = vmatmul.mubr.msk.f32.vlgmr.msra.gmra.mxu0 %vm1104_vm11, %v3469_v27 }
0x1615   : > { %4586 = vmatpush3.msra.mxu0 %v4161_v63 }
0x1616   : > { %4601 = vmatprep.subr.mxu0 %v4211_v22 }
0x16c7   : > { %v4570_v28 = vpop.f32.mrf.mxu0 }
0x16c8   : > { %v3356_v30 = vadd.f32 %v4570_v28, %v5561_v23  ;;  %v3785_v28 = vrot.slane %v5460_v59, %v2291_v11  ;;  %v3892_v11 = vld [vmem:[%s5724_s6 + $0x10] sm:$0xff] }
0x16c9   : > { %v3346_v31 = vpop.f32.mrf.mxu0 }
0x16ca   : > { %v3355_v32 = vadd.f32 %v3346_v31, %v3065_v29 }
0x16d4   : > { %v4584_v33 = vpop.f32.mrf.mxu0 }
0x16d6   : > { %v3549_v34 = vpop.f32.mrf.mxu0 }
0x16d7   : > { %4587 = vmatprep.mubr.msk.f32.mxu0 %vm1020_vm9, %v3549_v34 }
0x16d8   : > { %4588 = vmatmul.mubr.msk.f32.vlgmr.msra.gmra.mxu0 %vm1020_vm9, %v4584_v33 }
0x16d9   : > { %4602 = vmatpush3.msra.mxu0 %v4211_v22 }
0x16da   : > { %4603 = vmatprep.subr.mxu0 %v4210_v46 }
0x16db   : > { %4604 = vmatpush3.msra.mxu0 %v4210_v46 }
0x16dc   : > { %4608 = vmatprep.subr.mxu0 %v4938_v14 }
0x1798   : > { %v4589_v49 = vpop.f32.mrf.mxu0 }
0x1799   : > { %v3640_v48 = vadd.f32 %v4589_v49, %v3356_v30 }
0x179a   : > { %v3630_v36 = vpop.f32.mrf.mxu0 }
0x179b   : > { %v3646_v37 = vadd.f32 %v3644_v35, %v3640_v48  ;;  %v3639_v38 = vadd.f32 %v3630_v36, %v3355_v32  ;;  %v3893_v36 = vld [vmem:[%s5724_s6 + $0x18] sm:$0xff] }
0x179d   : > { %v3645_v24 = vadd.f32 %v3644_v35, %v3639_v38  ;;  %v3648_v23 = vadd.f32 %v3646_v37, %v5454_v58  ;;  %v3891_v37 = vld [vmem:[%s5724_s6 + $0x8] sm:$0xff]  ;;  %v3890_v38 = vld [vmem:[%s5724_s6] sm:$0xff] }
0x179f   : > { %v3652_v41 = vsel %vm2159_vm13, %v3648_v23, 0.0  ;;  %v3647_v42 = vadd.f32 %v3645_v24, %v5452_v57  ;;  %v4207_v57 = vld [vmem:[%s5728_s10 + $0x38] sm:$0xff] }
0x17a0   : > { %3653 = vadd.xlane.f32.xlu0 %v3652_v41  ;;  %4590 = vmatprep.subr.mxu1 %v4207_v57 }
0x17a1   : > { %v3649_v44 = vsel %vm721_vm5, %v3647_v42, 0.0  ;;  %4591 = vmatpush3.msra.mxu1 %v4207_v57 }
0x17a2   : > { %3650 = vadd.xlane.f32.xlu1 %v3649_v44  ;;  %4592 = vmatprep.subr.mxu1 %v4206_v50 }
0x17a3   : > { %4593 = vmatpush3.msra.mxu1 %v4206_v50 }
0x17a4   : > { %4594 = vmatprep.subr.mxu1 %v4205_v1 }
0x17a5   : > { %4595 = vmatpush3.msra.mxu1 %v4205_v1 }
0x17a6   : > { %4596 = vmatprep.subr.mxu1 %v4204_v3 }
0x17a7   : > { %4597 = vmatpush3.msra.mxu1 %v4204_v3 }
0x1829   : > { %v3654_v45 = vpop.xlane.xlu0 %3653 }
0x182a   : > { %v3656_v47 = vmul.f32 0.03125, %v3654_v45  ;;  %v3888_v45 = vrot.slane %v5460_v59, %v2410_v43 }
0x182b   : > { %v3651_v52 = vpop.xlane.xlu1 %3650 }
0x182c   : > { %v3658_v17 = vsub.f32 %v3648_v23, %v3656_v47  ;;  %v3655_v53 = vmul.f32 0.03125, %v3651_v52 }
0x182e   : > { %v3657_v55 = vsub.f32 %v3647_v42, %v3655_v53  ;;  %v3660_v60 = vmul.f32 %v3658_v17, %v3658_v17  ;;  %v3883_v42 = vrot.slane %v5460_v59, %v2404_v39 }
0x1830   : > { %v3664_v61 = vsel %vm2159_vm13, %v3660_v60, 0.0  ;;  %v3659_v51 = vmul.f32 %v3657_v55, %v3657_v55 }
0x1831   : > { %3665 = vadd.xlane.f32.xlu0 %v3664_v61 }
0x1832   : > { %v3661_v58 = vsel %vm721_vm5, %v3659_v51, 0.0 }
0x1833   : > { %3662 = vadd.xlane.f32.xlu1 %v3661_v58 }
0x18ba   : > { %v3666_v4 = vpop.xlane.xlu0 %3665 }
0x18bb   : > { %v3668_v56 = vmul.f32 0.03125, %v3666_v4 }
0x18bc   : > { %v3663_v5 = vpop.xlane.xlu1 %3662 }
0x18bd   : > { %v3670_v6 = vadd.f32 1e-05, %v3668_v56  ;;  %v3667_v7 = vmul.f32 0.03125, %v3663_v5 }
0x18bf   : > { %4775 = vrsqrt.f32 %v3670_v6  ;;  %v3669_v8 = vadd.f32 1e-05, %v3667_v7 }
0x18c1   : > { %4777 = vrsqrt.f32 %v3669_v8 }
0x18cc   : > { %v4776_v62 = vpop.eup %4775 }
0x18cd   : > { %v3674_v13 = vmul.f32 %v4776_v62, %v3658_v17 }
0x18ce   : > { %v4778_v15 = vpop.eup %4777 }
0x18cf   : > { %v3673_v16 = vmul.f32 %v4778_v15, %v3657_v55  ;;  %v3680_v18 = vmul.f32 %v3678_v12, %v3674_v13 }
0x18d1   : > { %v3679_v20 = vmul.f32 %v3678_v12, %v3673_v16  ;;  %v3686_v10 = vadd.f32 %v3684_v19, %v3680_v18 }
0x18d3   : > { %v3685_v21 = vadd.f32 %v3684_v19, %v3679_v20 }
0x18d5   : > { %4598 = vmatprep.mubr.msk.f32.mxu1 %vm721_vm5, %v3685_v21 }
0x18d6   : > { %4599 = vmatmul.mubr.msk.f32.vlgmr.msra.gmra.mxu1 %vm721_vm5, %v3686_v10 }
0x1996   : > { %v4600_v9 = vpop.f32.mrf.mxu1 }
0x1997   : > { %v3774_v25 = vadd.f32 %v4600_v9, %v3695_v54 }
0x1998   : > { %v3768_v26 = vpop.f32.mrf.mxu1 }
0x1999   : > { %v3769_v0 = vadd.f32 %v3768_v26, %v3695_v54  ;;  %v3778_v63 = vmax.f32 %v3774_v25, 0.0 }
0x199b   : > { %v3777_v27 = vmax.f32 %v3769_v0, 0.0 }
0x199d   : > { %4605 = vmatprep.mubr.msk.f32.mxu0 %vm631_vm2, %v3777_v27 }
0x199e   : > { %4606 = vmatmul.mubr.msk.f32.vlgmr.msra.gmra.mxu0 %vm631_vm2, %v3778_v63 }
0x199f   : > { %4609 = vmatpush3.msra.mxu0 %v3893_v36  ;;  %4616 = vmatprep.mubr.msk.f32.mxu0 %vm4950_vm14, %v4938_v14 }
0x19a0   : > { %4610 = vmatprep.subr.mxu0 %v4938_v14 }
0x19a1   : > { %4611 = vmatpush3.msra.mxu0 %v3892_v11 }
0x19a2   : > { %4612 = vmatprep.subr.mxu0 %v4938_v14 }
0x19a3   : > { %4613 = vmatpush3.msra.mxu0 %v3891_v37 }
0x19a4   : > { %4614 = vmatprep.subr.mxu0 %v4938_v14  ;;  %v3894_v14 = vld [vmem:[%s5725_s7 + $0x3] sm:$0x1] }
0x19a5   : > { %4615 = vmatpush3.msra.mxu0 %v3890_v38 }
0x1a5e   : > { %v4607_v29 = vpop.f32.mrf.mxu0 }
0x1a60   : > { %v3858_v30 = vpop.f32.mrf.mxu0 }
0x1a61   : > { %v3859_v31 = vadd.f32 %v3858_v30, %v3785_v28 }
0x1a63   : > { %v3866_v32 = vadd.f32 %v3859_v31, %v3685_v21 }
0x1a65   : > { %v3867_v2 = vsel %vm721_vm5, %v3866_v32, 0.0 }
0x1a66   : > { %3868 = vadd.xlane.f32.xlu1 %v3867_v2 }
0x1aef   : > { %v3869_v33 = vpop.xlane.xlu1 %3868 }
0x1af0   : > { %v3870_v34 = vmul.f32 0.03125, %v3869_v33 }
0x1af2   : > { %v3871_v35 = vsub.f32 %v3866_v32, %v3870_v34 }
0x1af4   : > { %v3872_v49 = vmul.f32 %v3871_v35, %v3871_v35 }
0x1af6   : > { %v3873_v48 = vsel %vm721_vm5, %v3872_v49, 0.0 }
0x1af7   : > { %3874 = vadd.xlane.f32.xlu0 %v3873_v48 }
0x1b80   : > { %v3875_v24 = vpop.xlane.xlu0 %3874 }
0x1b81   : > { %v3876_v23 = vmul.f32 0.03125, %v3875_v24 }
0x1b83   : > { %v3877_v41 = vadd.f32 1e-05, %v3876_v23 }
0x1b85   : > { %4779 = vrsqrt.f32 %v3877_v41 }
0x1b92   : > { %v4780_v44 = vpop.eup %4779 }
0x1b93   : > { %v3879_v47 = vmul.f32 %v4780_v44, %v3871_v35 }
0x1b95   : > { %v3884_v52 = vmul.f32 %v3883_v42, %v3879_v47 }
0x1b97   : > { %v3889_v17 = vadd.f32 %v3888_v45, %v3884_v52 }
0x1b99   : > { %4617 = vmatmul.mubr.msk.f32.vlgmr.msra.gmra.mxu0 %vm721_vm5, %v3889_v17 }
0x1c59   : > { %v3964_v39 = vpop.f32.mrf.mxu0 }
0x1c5a   : > { %v3965_v53 = vadd.f32 %v3964_v39, %v3894_v14 }
0x1c5b   : > { %v4618_v40 = vpop.f32.mrf.mxu0 }
0x1c5c   : > { %3968 = vst.msk [vmem:[%s508_s17] sm:$0x1] %vm2159_vm13, %v3965_v53 }
0x1c5d   : > { %4875 = shalt.err (!%p4872_p3)
}
0x1c5e   : > { %s4876_s12 = scalar_lea.hbm %s5680_s19, 16  ;;  %s4880_s28 = scalar_lea.hbm %s5731_s13, 32 }
0x1c5f   : > { %p4877_p7 = scmp.ne.s32.totalorder %s5680_s19, %s4876_s12  ;;  %p4881_p8 = scmp.lt.s32.totalorder %s5680_s19, %s5731_s13 }
0x1c60   : > { %p4882_p11 = scmp.lt.s32.totalorder %s4880_s28, %s4876_s12 }
0x1c61   : > { %p4878_p10 = pnand %p4877_p7, %p5777_p1 }
0x1c62   : > { %p4883_p13 = por %p4882_p11, %p4881_p8 }
0x1c63   : > { %p4879_p5 = pneg %p4878_p10 }
0x1c65   : > { %p4884_p0 = pnand %p4883_p13, %p4879_p5 }
0x1c67   : > { %4887 = shalt.err (!%p4884_p0)
}
0x1c68   : > { %4629 = dma.vmem_to_hbm [thread:$0]  (%p5777_p1), %s3983_s18, 16, %s5680_s19, %s3970_s20  }
0x1c69 PF: > { %s5778_s14 = sld [smem:[#allocation12_spill]] }
0x1c6a   : > { %s5779_s17 = sld [smem:[#allocation15_spill]] }
0x1c6b   : > { %s5780_s22 = sld [smem:[#allocation14_spill]] }
0x1c6f   : > { %s3994_s21 = sand.u32 1, %s5778_s14  }
0x1c70   : > { %p5781_p2 = scmp.ne.s32.totalorder %s5779_s17, 0  ;;  %s3995_s30 = scalar_lea.sflag [#allocation4], %s3994_s21 }
0x1c71   : > { %p5782_p4 = scmp.ge.s32.totalorder %s5780_s22, 2 }
0x1c73   : > { %p4643_p6 = pnand %p5782_p4, %p5781_p2 }
0x1c75   : > { %p4644_p9 = pneg %p4643_p6 }
0x1c77   : > { %4913 = dma.done.wait (%p4644_p9), %s3995_s30, 16  }
0x1c78   : > { %4915 = vsyncadd (%p4644_p9), %s3995_s30, 4294967280  ;;  %s5783_s28 = sld [smem:[#allocation16_spill]]  ;;  %s5786_s25 = smov %s4922_s26 }
0x1c79   : > { %s5784_s29 = sld [smem:[#allocation13_spill]] }
0x1c7a   : > { %s5785_s27 = sld [smem:[#allocation17_spill]] }
0x1c7e   : > { %p27_p12 = scmp.ge.s32.totalorder %s5783_s28, 4  }
0x1c7f   : > { %s5787_s26 = smov %s5784_s29 }
0x1c80   :  { %29 = sbr.rel (!%p27_p12) target bundleno = 9 (0x9), region = 136 }
0x1c85   :  { %3999 = vsyncpa [#allocation3], 1 }
0x1c86   :  { %4001 = vsyncpa [#allocation3 + $0x1], 1 }
0x1c87   :  { %4002 = vsyncpa [#allocation6], 1 }
0x1c88   :  { %4003 = vsyncpa [#allocation4], 1 }
0x1c89   :  { %4005 = vsyncpa [#allocation4 + $0x1], 1 }

</bundles_post_ra>
